<compile_context>
chip_gen: v7x
topology: tpu7x:2x2x1
jax: 0.10.0
libtpu: 0.0.40
codegen_flags: <defaults>
</compile_context>

<pallas_src>
import functools

import jax
import jax.numpy as jnp
from jax import lax
from jax.experimental import pallas as pl
from jax.experimental.pallas import tpu as pltpu


def _round_up(x, m):
    return ((x + m - 1) // m) * m


def _gated_logits_kernel(*refs, d, with_bias):
    """One (TILE_N, L) slab of instances -> one lane-dense (K, TILE_N) logits tile."""
    if with_bias:
        x_ref, wvu_ref, bvu_ref, ww_ref, bw_ref, out_ref = refs
    else:
        x_ref, wvu_ref, bvu_ref, ww_ref, out_ref = refs
        bw_ref = None

    # Fused V/U projection: a single MXU matmul, f32 accumulation even when
    # x / wvu are bf16.
    h = jnp.dot(x_ref[...], wvu_ref[...],
                preferred_element_type=jnp.float32) + bvu_ref[...]   # (TILE_N, 2*Dpad)

    # d is a multiple of 128, so these lane-slices are tile aligned (no relayout).
    a_v = jnp.tanh(h[:, :d])                        # (TILE_N, Dpad)  EUP
    a_u = 0.5 * (1.0 + jnp.tanh(0.5 * h[:, d:]))    # sigmoid via tanh: 1 EUP push
    gated = a_v * a_u                               # (TILE_N, Dpad)  VPU (f32, v5e-safe)

    # A^T tile: contract D of ww (Dpad, K) with D of gated (TILE_N, Dpad)
    # -> (K, TILE_N) directly in lane-dense layout (unmasked full-width stores
    # except for the final partial block, which Pallas masks).
    a_t = lax.dot_general(
        ww_ref[...], gated,
        dimension_numbers=(((0,), (1,)), ((), ())),
        preferred_element_type=jnp.float32,
    )
    if with_bias:
        a_t = a_t + bw_ref[...]                     # bw is (K, 1), broadcasts over TILE_N
    out_ref[...] = a_t


def _softmax_over_n_kernel(logits_ref, out_ref):
    """Softmax over the N axis of the exact (K, N) logits block (no pad columns)."""
    a = logits_ref[...]                             # (K, N) f32
    m = jnp.max(a, axis=1, keepdims=True)
    e = jnp.exp(a - m)
    s = jnp.sum(e, axis=1, keepdims=True)
    out_ref[...] = e * pl.reciprocal(s, approx=False)   # only K reciprocals total


def attention_gated(x, wv, bv, wu, bu, ww, bw, *, tile_n=1024, norm=True,
                    vmem_cap_bytes=24 * 1024 * 1024):
    """x: (N, L).  Returns (K, N) attention weights (softmaxed over N if norm).

    If x is bf16 (cast upstream), the projection weights are cast to bf16 too;
    x is never re-written in the wrapper (single HBM pass over x).
    """
    N, L = x.shape
    D = wv.shape[1]
    K = ww.shape[1]

    # --- Pad D (weights only, tiny) so fused-projection slices stay lane aligned.
    d_pad = _round_up(D, 128)
    if d_pad != D:
        pd = d_pad - D
        wv = jnp.pad(wv, ((0, 0), (0, pd)))
        wu = jnp.pad(wu, ((0, 0), (0, pd)))
        bv = jnp.pad(bv, (0, pd))
        bu = jnp.pad(bu, (0, pd))
        ww = jnp.pad(ww, ((0, pd), (0, 0)))   # zero rows -> padded D contributes 0

    # --- Fuse V and U projections into one (L, 2*Dpad) weight / (1, 2*Dpad) bias.
    wvu = jnp.concatenate([wv, wu], axis=1).astype(x.dtype)          # MXU operand dtype = x dtype
    bvu = jnp.concatenate([bv, bu], axis=0).reshape(1, 2 * d_pad).astype(jnp.float32)
    ww2 = ww.astype(jnp.float32)                                     # (Dpad, K)
    bw2 = bw.reshape(K, 1).astype(jnp.float32)                       # (K, 1)

    # --- Tile sizing: biggest tile that fits the VMEM budget, multiple of 128.
    x_item = jnp.dtype(x.dtype).itemsize
    w_item = jnp.dtype(wvu.dtype).itemsize
    tile_n = min(int(tile_n), _round_up(N, 128))
    tile_n = max(128, _round_up(tile_n, 128))

    def _vmem_need(t):
        x_buf = 2 * t * L * x_item                          # double-buffered x tiles
        w_buf = 2 * (L * 2 * d_pad * w_item + 2 * d_pad * 4 + d_pad * K * 4 + K * 4)
        act = 2 * t * 2 * d_pad * 4                         # h / gated temporaries (rough)
        out_buf = 2 * K * t * 4
        return x_buf + w_buf + act + out_buf

    while tile_n > 128 and _vmem_need(tile_n) > vmem_cap_bytes:
        tile_n = max(128, (tile_n // 2 // 128) * 128)

    # Explicit scoped-VMEM limit so big tiles also work on v5e (16 MiB default
    # scoped) while staying well under v7x's 64 MiB physical VMEM.
    vmem_limit = int(min(48 * 1024 * 1024,
                         max(32 * 1024 * 1024, _vmem_need(tile_n) + (8 << 20))))

    with_bias = not norm   # under softmax over N a per-row constant shift is a no-op
    grid = (pl.cdiv(N, tile_n),)

    in_specs = [
        pl.BlockSpec((tile_n, L), lambda i: (i, 0)),        # x tile (streamed, partial last block masked)
        pl.BlockSpec((L, 2 * d_pad), lambda i: (0, 0)),     # fused V/U weight (resident)
        pl.BlockSpec((1, 2 * d_pad), lambda i: (0, 0)),     # fused V/U bias
        pl.BlockSpec((d_pad, K), lambda i: (0, 0)),         # attention weight
    ]
    inputs = [x, wvu, bvu, ww2]
    if with_bias:
        in_specs.append(pl.BlockSpec((K, 1), lambda i: (0, 0)))
        inputs.append(bw2)

    logits = pl.pallas_call(
        functools.partial(_gated_logits_kernel, d=d_pad, with_bias=with_bias),
        out_shape=jax.ShapeDtypeStruct((K, N), jnp.float32),   # exact, no pad columns
        grid=grid,
        in_specs=in_specs,
        out_specs=pl.BlockSpec((K, tile_n), lambda i: (0, i)),
        compiler_params=pltpu.CompilerParams(
            dimension_semantics=("parallel",),                  # tiles independent (megacore)
            vmem_limit_bytes=vmem_limit),
    )(*inputs)

    if not norm:
        return logits

    # Second pass: softmax over N on the exact (K, N) logits.
    # TODO(synk): for extremely large bags (N >~ 1M) tile this with a two-pass
    # max/sum reduction instead of a single full-VMEM block.
    return pl.pallas_call(
        _softmax_over_n_kernel,
        out_shape=jax.ShapeDtypeStruct((K, N), jnp.float32),
        in_specs=[pl.BlockSpec(memory_space=pltpu.MemorySpace.VMEM)],
        out_specs=pl.BlockSpec(memory_space=pltpu.MemorySpace.VMEM),
    )(logits)


def _init_linear(key, fan_in, fan_out):
    # Deterministic init mimicking nn.Linear default: U(-1/sqrt(fan_in), +1/sqrt(fan_in))
    kw, kb = jax.random.split(key)
    bound = 1.0 / jnp.sqrt(fan_in)
    w = jax.random.uniform(kw, (fan_in, fan_out), jnp.float32, -bound, bound)
    b = jax.random.uniform(kb, (fan_out,), jnp.float32, -bound, bound)
    return w, b


def _reference(x, wv, bv, wu, bu, ww, bw, norm=True):
    a_v = jnp.tanh(x @ wv + bv)
    a_u = jax.nn.sigmoid(x @ wu + bu)
    a = (a_v * a_u) @ ww + bw          # (N, K)
    a = a.T                            # (K, N)
    if norm:
        a = jax.nn.softmax(a, axis=1)
    return a


if __name__ == "__main__":
    # Module defaults: L=512, D=128, K=1.  N=300 instances exercises the
    # ragged final tile (masked partial stores) without any wrapper-side pad.
    N, L, D, K = 300, 512, 128, 1

    root = jax.random.PRNGKey(0)
    kx, kv, ku, kw = jax.random.split(root, 4)

    x = jax.random.normal(kx, (N, L), jnp.float32)
    wv, bv = _init_linear(kv, L, D)
    wu, bu = _init_linear(ku, L, D)
    ww, bw = _init_linear(kw, D, K)

    ref = _reference(x, wv, bv, wu, bu, ww, bw)

    # 1) Default path (single tile covers N).
    out = jax.block_until_ready(attention_gated(x, wv, bv, wu, bu, ww, bw))
    assert out.shape == (K, N)
    assert jnp.allclose(out, ref, atol=2e-5, rtol=1e-3), "mismatch vs reference"
    assert jnp.all(jnp.abs(jnp.sum(out, axis=1) - 1.0) < 1e-4), "softmax rows must sum to 1"

    # 2) Multi-tile path with a ragged last block (grid of 3 tiles of 128).
    out_mt = jax.block_until_ready(
        attention_gated(x, wv, bv, wu, bu, ww, bw, tile_n=128))
    assert jnp.allclose(out_mt, ref, atol=2e-5, rtol=1e-3), "multi-tile mismatch"

    # 3) Un-normalized logits path (bias applied in-kernel).
    ref_logits = _reference(x, wv, bv, wu, bu, ww, bw, norm=False)
    out_logits = jax.block_until_ready(
        attention_gated(x, wv, bv, wu, bu, ww, bw, norm=False))
    assert jnp.allclose(out_logits, ref_logits, atol=1e-4, rtol=1e-3), "logits mismatch"

    # 4) bf16-upstream path: x already bf16 (no wrapper cast of x inside the op).
    out_bf16 = jax.block_until_ready(
        attention_gated(x.astype(jnp.bfloat16), wv, bv, wu, bu, ww, bw))
    assert out_bf16.shape == (K, N)
    assert jnp.allclose(out_bf16, ref, atol=2e-3), "bf16 path mismatch vs reference"

    print("KERNEL_OK")
</pallas_src>

<mosaic_0001>
module attributes {stable_mosaic.version = 11 : i64} {
  func.func @_gated_logits_kernel(%arg0: i32, %arg1: memref<384x512xf32, #tpu.memory_space<vmem>>, %arg2: memref<512x256xf32, #tpu.memory_space<vmem>>, %arg3: memref<1x256xf32, #tpu.memory_space<vmem>>, %arg4: memref<128x1xf32, #tpu.memory_space<vmem>>, %arg5: memref<1x384xf32, #tpu.memory_space<vmem>>) attributes {dimension_semantics = [#tpu.dimension_semantics<parallel>], iteration_bounds = array<i64: 1>, scalar_prefetch = 0 : i64, scratch_operands = 0 : i64, tpu.core_type = #tpu.core_type<tc>, window_params = [{transform_indices = @transform_0, window_bounds = array<i64: 384, 512>}, {pipeline_mode = #tpu.pipeline_mode<synchronous>, transform_indices = @transform_1, window_bounds = array<i64: 512, 256>}, {pipeline_mode = #tpu.pipeline_mode<synchronous>, transform_indices = @transform_2, window_bounds = array<i64: 1, 256>}, {pipeline_mode = #tpu.pipeline_mode<synchronous>, transform_indices = @transform_3, window_bounds = array<i64: 128, 1>}, {transform_indices = @transform_4, window_bounds = array<i64: 1, 384>}]} {
    %c0 = arith.constant 0 : index
    %c0_0 = arith.constant 0 : index
    %0 = vector.load %arg1[%c0, %c0_0] : memref<384x512xf32, #tpu.memory_space<vmem>>, vector<384x512xf32>
    %c0_1 = arith.constant 0 : index
    %c0_2 = arith.constant 0 : index
    %1 = vector.load %arg2[%c0_1, %c0_2] : memref<512x256xf32, #tpu.memory_space<vmem>>, vector<512x256xf32>
    %cst = arith.constant dense<0.000000e+00> : vector<384x256xf32>
    %2 = tpu.matmul %0, %1, %cst {dimension_numbers = #tpu.dot_dimension_numbers<[1], [0], [0], [1], [0, 0, 1, 1], [], []>} : vector<384x512xf32>, vector<512x256xf32>, vector<384x256xf32> -> vector<384x256xf32>
    %c0_3 = arith.constant 0 : index
    %c0_4 = arith.constant 0 : index
    %3 = vector.load %arg3[%c0_3, %c0_4] : memref<1x256xf32, #tpu.memory_space<vmem>>, vector<1x256xf32>
    %4 = vector.broadcast %3 : vector<1x256xf32> to vector<384x256xf32>
    %5 = arith.addf %2, %4 : vector<384x256xf32>
    %6 = vector.extract_strided_slice %5 {offsets = [0, 0], sizes = [384, 128], strides = [1, 1]} : vector<384x256xf32> to vector<384x128xf32>
    %7 = math.tanh %6 : vector<384x128xf32>
    %8 = vector.extract_strided_slice %5 {offsets = [0, 128], sizes = [384, 128], strides = [1, 1]} : vector<384x256xf32> to vector<384x128xf32>
    %cst_5 = arith.constant 5.000000e-01 : f32
    %9 = vector.broadcast %cst_5 : f32 to vector<384x128xf32>
    %10 = arith.mulf %9, %8 : vector<384x128xf32>
    %11 = math.tanh %10 : vector<384x128xf32>
    %cst_6 = arith.constant 1.000000e+00 : f32
    %12 = vector.broadcast %cst_6 : f32 to vector<384x128xf32>
    %13 = arith.addf %12, %11 : vector<384x128xf32>
    %cst_7 = arith.constant 5.000000e-01 : f32
    %14 = vector.broadcast %cst_7 : f32 to vector<384x128xf32>
    %15 = arith.mulf %14, %13 : vector<384x128xf32>
    %16 = arith.mulf %7, %15 : vector<384x128xf32>
    %c0_8 = arith.constant 0 : index
    %c0_9 = arith.constant 0 : index
    %17 = vector.load %arg4[%c0_8, %c0_9] : memref<128x1xf32, #tpu.memory_space<vmem>>, vector<128x1xf32>
    %cst_10 = arith.constant dense<0.000000e+00> : vector<1x384xf32>
    %18 = tpu.matmul %17, %16, %cst_10 {dimension_numbers = #tpu.dot_dimension_numbers<[0], [1], [1], [0], [0, 1, 1, 0], [], []>} : vector<128x1xf32>, vector<384x128xf32>, vector<1x384xf32> -> vector<1x384xf32>
    %c0_11 = arith.constant 0 : index
    %c0_12 = arith.constant 0 : index
    %19 = vector.load %arg5[%c0_11, %c0_12] : memref<1x384xf32, #tpu.memory_space<vmem>>, vector<1x384xf32>
    tpu.vector_store %arg5[%c0_11, %c0_12], %18 {strides = array<i32>} : memref<1x384xf32, #tpu.memory_space<vmem>>, vector<1x384xf32>,
    return
  }
  func.func @transform_0(%arg0: i32) -> (i32, i32) {
    %c0_i32 = arith.constant 0 : i32
    %c0_i32_0 = arith.constant 0 : i32
    return %arg0, %c0_i32 : i32, i32
  }
  func.func @transform_1(%arg0: i32) -> (i32, i32) {
    %c0_i32 = arith.constant 0 : i32
    %c0_i32_0 = arith.constant 0 : i32
    %c0_i32_1 = arith.constant 0 : i32
    return %c0_i32, %c0_i32_0 : i32, i32
  }
  func.func @transform_2(%arg0: i32) -> (i32, i32) {
    %c0_i32 = arith.constant 0 : i32
    %c0_i32_0 = arith.constant 0 : i32
    %c0_i32_1 = arith.constant 0 : i32
    return %c0_i32, %c0_i32_0 : i32, i32
  }
  func.func @transform_3(%arg0: i32) -> (i32, i32) {
    %c0_i32 = arith.constant 0 : i32
    %c0_i32_0 = arith.constant 0 : i32
    %c0_i32_1 = arith.constant 0 : i32
    return %c0_i32, %c0_i32_0 : i32, i32
  }
  func.func @transform_4(%arg0: i32) -> (i32, i32) {
    %c0_i32 = arith.constant 0 : i32
    %c0_i32_0 = arith.constant 0 : i32
    return %c0_i32, %arg0 : i32, i32
  }
}

</mosaic_0001>

<bundles_post_ra>
// kernel: tpu_custom_call.1
= control target key start
LH: loop header
LB: loop body
LE: loop exit
PB: predicated region body
PF: predicated region fallthrough
CT: control target
= control target key end

     0   :  { %9 = vsyncpa [#allocation3], 0  ;;  %s3116_s0 = inlined_call_operand.hbm [shape: f32[300,512], index: 0, kind: input, shape index: {}]   ;;  %s3117_s1 = inlined_call_operand.hbm [shape: f32[512,256], index: 1, kind: input, shape index: {}]   ;;  %s3118_s2 = inlined_call_operand.vmem [shape: f32[1,256], index: 2, kind: input, shape index: {}]   ;;  %s3119_s3 = inlined_call_operand.vmem [shape: f32[128,1], index: 3, kind: input, shape index: {}]   ;;  %s3120_s4 = inlined_call_operand.hbm [shape: f32[1,300], index: 4, kind: output, shape index: {}]  }
   0x1   :  { %10 = vsyncpa [#allocation6], 0 }
   0x2   :  { %11 = vsyncpa [#allocation4], 0 }
   0x3   :  { %16 = vsyncadd [#allocation3], 5120  ;;  %s2378_s15 = smov [#allocation2]   ;;  %s2306_s19 = scalar_lea.hbm %s3116_s0, 19456 }
   0x4   :  { %s17_s16 = sshll.u32 %s2378_s15, 4  ;;  %p2307_p0 = scmp.ne.s32.totalorder %s3116_s0, %s2306_s19  ;;  %s18_s16 = int_to_ptr.vmem [resolvable:$true] %s17_s16 }
   0x5   :  { %p2310_p1 = scmp.lt.u32.totalorder %s2306_s19, %s3116_s0 }
   0x7   :  { %p2312_p2 = pnand %p2310_p1, %p2307_p0 }
   0x9   :  { %2315 = shalt.err (!%p2312_p2)
}
   0xa   :  { %s2316_s24 = scalar_lea.vmem %s18_s16, 19456  ;;  %s2320_s25 = scalar_lea.vmem %s18_s16, 24576 }
   0xb   :  { %p2317_p3 = scmp.ne.s32.totalorder %s18_s16, %s2316_s24  ;;  %p2321_p4 = scmp.lt.s32.totalorder %s18_s16, %s18_s16 }
   0xc   :  { %p2322_p5 = scmp.lt.s32.totalorder %s2320_s25, %s2316_s24 }
   0xe   :  { %p2323_p6 = por %p2322_p5, %p2321_p4 }
  0x10   :  { %p2324_p7 = pnand %p2323_p6, %p2317_p3 }
  0x12   :  { %2327 = shalt.err (!%p2324_p7)
}
  0x13   :  { %s2379_s26 = smov 512   ;;  %s2380_s27 = smov 32  }
  0x14   :  { %23 = dma.hbm_to_vmem [thread:$0]  %s3116_s0, 19456, %s18_s16, [#allocation3], %s2379_s26, %s2379_s26, %s2380_s27  }
  0x15   :  { %s2381_s30 = smov [#allocation5]   ;;  %s2328_s8 = scalar_lea.hbm %s3117_s1, 16384 }
  0x16   :  { %s29_s5 = sshll.u32 %s2381_s30, 4  ;;  %p2329_p8 = scmp.ne.s32.totalorder %s3117_s1, %s2328_s8  ;;  %s30_s5 = int_to_ptr.vmem [resolvable:$true] %s29_s5 }
  0x17   :  { %p2332_p9 = scmp.lt.u32.totalorder %s2328_s8, %s3117_s1 }
  0x19   :  { %p2334_p10 = pnand %p2332_p9, %p2329_p8 }
  0x1b   :  { %2337 = shalt.err (!%p2334_p10)
}
  0x1c   :  { %s2338_s13 = scalar_lea.vmem %s30_s5, 16384  ;;  %p2343_p12 = scmp.lt.s32.totalorder %s30_s5, %s30_s5 }
  0x1d   :  { %p2339_p11 = scmp.ne.s32.totalorder %s30_s5, %s2338_s13  ;;  %p2344_p13 = scmp.lt.s32.totalorder %s2338_s13, %s2338_s13 }
  0x1f   :  { %p2345_p0 = por %p2344_p13, %p2343_p12 }
  0x21   :  { %p2346_p1 = pnand %p2345_p0, %p2339_p11 }
  0x23   :  { %2349 = shalt.err (!%p2346_p1)
}
  0x24   :  { %s2382_s0 = smov 256   ;;  %s2383_s14 = smov 16  }
  0x25   :  { %35 = dma.hbm_to_vmem [thread:$0]  %s3117_s1, 16384, %s30_s5, [#allocation6], %s2382_s0, %s2382_s0, %s2383_s14  }
  0x26   :  { %2372 = dma.done.wait [#allocation3], 24576  }
  0x27   :  { %2373 = vsyncadd [#allocation3], 4294942720 }
  0x28   :  { %2374 = dma.done.wait [#allocation6], 16384  }
  0x29   :  { %2375 = vsyncadd [#allocation6], 4294950912  ;;  %v239_v0 = vld [vmem:[#allocation5 + $0x8] sm:$0xff]  ;;  %v241_v1 = vld [vmem:[#allocation5 + $0x18] sm:$0xff]  ;;  %vm2385_vm0 = vmmov 0  }
  0x2a   :  { %v238_v2 = vld [vmem:[#allocation5] sm:$0xff]  ;;  %v1695_v3 = vpack.c.bf16 %v241_v1, %v239_v0  ;;  %v240_v4 = vld [vmem:[#allocation5 + $0x10] sm:$0xff]  ;;  %v243_v5 = vld [vmem:[#allocation5 + $0x28] sm:$0xff] }
  0x2b   :  { %v245_v6 = vld [vmem:[#allocation5 + $0x38] sm:$0xff]  ;;  %v1697_v7 = vpack.c.bf16 %v240_v4, %v238_v2  ;;  %v242_v9 = vld [vmem:[#allocation5 + $0x20] sm:$0xff]  ;;  %v244_v10 = vld [vmem:[#allocation5 + $0x30] sm:$0xff] }
  0x2c   :  { %v1699_v8 = vpack.c.bf16 %v245_v6, %v243_v5  ;;  %v247_v11 = vld [vmem:[#allocation5 + $0x48] sm:$0xff]  ;;  %1696 = vmatprep.subr.bf16.mxu0 %v1695_v3  ;;  %v249_v12 = vld [vmem:[#allocation5 + $0x58] sm:$0xff]  ;;  %v1701_v13 = vpack.c.bf16 %v244_v10, %v242_v9  ;;  %v246_v15 = vld [vmem:[#allocation5 + $0x40] sm:$0xff] }
  0x2d   :  { %1698 = vmatpush1.bf16.msra.mxu0 %v1697_v7  ;;  %v1703_v14 = vpack.c.bf16 %v249_v12, %v247_v11  ;;  %v248_v16 = vld [vmem:[#allocation5 + $0x50] sm:$0xff]  ;;  %v251_v17 = vld [vmem:[#allocation5 + $0x68] sm:$0xff]  ;;  %v253_v18 = vld [vmem:[#allocation5 + $0x78] sm:$0xff] }
  0x2e   :  { %1700 = vmatprep.subr.bf16.mxu0 %v1699_v8  ;;  %v1705_v19 = vpack.c.bf16 %v248_v16, %v246_v15  ;;  %v1707_v20 = vpack.c.bf16 %v253_v18, %v251_v17  ;;  %v250_v21 = vld [vmem:[#allocation5 + $0x60] sm:$0xff]  ;;  %v252_v22 = vld [vmem:[#allocation5 + $0x70] sm:$0xff]  ;;  %v255_v23 = vld [vmem:[#allocation5 + $0x88] sm:$0xff] }
  0x2f   :  { %v257_v24 = vld [vmem:[#allocation5 + $0x98] sm:$0xff]  ;;  %v1709_v25 = vpack.c.bf16 %v252_v22, %v250_v21  ;;  %v254_v26 = vld [vmem:[#allocation5 + $0x80] sm:$0xff]  ;;  %v256_v27 = vld [vmem:[#allocation5 + $0x90] sm:$0xff] }
  0x30   :  { %v1711_v28 = vpack.c.bf16 %v257_v24, %v255_v23  ;;  %v259_v29 = vld [vmem:[#allocation5 + $0xa8] sm:$0xff]  ;;  %v305_v31 = vld [vmem:[#allocation5 + $0x218] sm:$0xff]  ;;  %v302_v34 = vld [vmem:[#allocation5 + $0x200] sm:$0xff]  ;;  %v1713_v37 = vpack.c.bf16 %v256_v27, %v254_v26 }
  0x31   :  { %1702 = vmatpush1.bf16.msra.mxu0 %v1701_v13  ;;  %v303_v30 = vld [vmem:[#allocation5 + $0x208] sm:$0xff]  ;;  %v261_v32 = vld [vmem:[#allocation5 + $0xb8] sm:$0xff]  ;;  %v304_v35 = vld [vmem:[#allocation5 + $0x210] sm:$0xff] }
  0x32   :  { %1704 = vmatprep.subr.bf16.mxu0 %v1703_v14  ;;  %v2438_v33 = vpack.c.bf16 %v305_v31, %v303_v30  ;;  %v2440_v36 = vpack.c.bf16 %v304_v35, %v302_v34  ;;  %v307_v38 = vld [vmem:[#allocation5 + $0x228] sm:$0xff]  ;;  %v309_v39 = vld [vmem:[#allocation5 + $0x238] sm:$0xff]  ;;  %v306_v40 = vld [vmem:[#allocation5 + $0x220] sm:$0xff]  ;;  %v1715_v41 = vpack.c.bf16 %v261_v32, %v259_v29 }
  0x33   :  { %v258_v42 = vld [vmem:[#allocation5 + $0xa0] sm:$0xff]  ;;  %v260_v43 = vld [vmem:[#allocation5 + $0xb0] sm:$0xff]  ;;  %v2444_v44 = vpack.c.bf16 %v309_v39, %v307_v38  ;;  %v263_v46 = vld [vmem:[#allocation5 + $0xc8] sm:$0xff] }
  0x34   :  { %1879 = vmatprep.subr.bf16.mxu1 %v2438_v33  ;;  %v308_v45 = vld [vmem:[#allocation5 + $0x230] sm:$0xff]  ;;  %v265_v47 = vld [vmem:[#allocation5 + $0xd8] sm:$0xff]  ;;  %v311_v49 = vld [vmem:[#allocation5 + $0x248] sm:$0xff]  ;;  %v1717_v53 = vpack.c.bf16 %v260_v43, %v258_v42 }
  0x35   :  { %1706 = vmatpush1.bf16.msra.mxu0 %v1705_v19  ;;  %1895 = vmatpush1.bf16.msra.mxu1 %v2440_v36  ;;  %v2446_v48 = vpack.c.bf16 %v308_v45, %v306_v40  ;;  %v313_v50 = vld [vmem:[#allocation5 + $0x258] sm:$0xff]  ;;  %v310_v51 = vld [vmem:[#allocation5 + $0x240] sm:$0xff]  ;;  %v312_v52 = vld [vmem:[#allocation5 + $0x250] sm:$0xff]  ;;  %v1719_v57 = vpack.c.bf16 %v265_v47, %v263_v46 }
  0x36   :  { %1708 = vmatprep.subr.bf16.mxu0 %v1707_v20  ;;  %1880 = vmatprep.subr.bf16.mxu1 %v2444_v44  ;;  %v262_v54 = vld [vmem:[#allocation5 + $0xc0] sm:$0xff]  ;;  %v264_v55 = vld [vmem:[#allocation5 + $0xd0] sm:$0xff]  ;;  %v2449_v56 = vpack.c.bf16 %v313_v50, %v311_v49  ;;  %v267_v58 = vld [vmem:[#allocation5 + $0xe8] sm:$0xff]  ;;  %v2452_v59 = vpack.c.bf16 %v312_v52, %v310_v51 }
  0x37   :  { %v315_v60 = vld [vmem:[#allocation5 + $0x268] sm:$0xff]  ;;  %v317_v61 = vld [vmem:[#allocation5 + $0x278] sm:$0xff]  ;;  %v314_v0 = vld [vmem:[#allocation5 + $0x260] sm:$0xff]  ;;  %v1721_v2 = vpack.c.bf16 %v264_v55, %v262_v54 }
  0x38   :  { %v269_v62 = vld [vmem:[#allocation5 + $0xf8] sm:$0xff]  ;;  %v2455_v63 = vpack.c.bf16 %v317_v61, %v315_v60  ;;  %v316_v1 = vld [vmem:[#allocation5 + $0x270] sm:$0xff]  ;;  %v319_v3 = vld [vmem:[#allocation5 + $0x288] sm:$0xff] }
  0x39   :  { %1710 = vmatpush1.bf16.msra.mxu0 %v1709_v25  ;;  %1896 = vmatpush1.bf16.msra.mxu1 %v2446_v48  ;;  %v321_v4 = vld [vmem:[#allocation5 + $0x298] sm:$0xff]  ;;  %v1723_v5 = vpack.c.bf16 %v269_v62, %v267_v58  ;;  %v266_v6 = vld [vmem:[#allocation5 + $0xe0] sm:$0xff]  ;;  %v268_v7 = vld [vmem:[#allocation5 + $0xf0] sm:$0xff]  ;;  %v2458_v9 = vpack.c.bf16 %v316_v1, %v314_v0 }
  0x3a   :  { %1712 = vmatprep.subr.bf16.mxu0 %v1711_v28  ;;  %1881 = vmatprep.subr.bf16.mxu1 %v2449_v56  ;;  %v271_v8 = vld [vmem:[#allocation5 + $0x108] sm:$0xff]  ;;  %v273_v10 = vld [vmem:[#allocation5 + $0x118] sm:$0xff]  ;;  %v2461_v11 = vpack.c.bf16 %v321_v4, %v319_v3  ;;  %v318_v12 = vld [vmem:[#allocation5 + $0x280] sm:$0xff]  ;;  %v1725_v16 = vpack.c.bf16 %v268_v7, %v266_v6 }
  0x3b   :  { %v320_v13 = vld [vmem:[#allocation5 + $0x290] sm:$0xff]  ;;  %v323_v14 = vld [vmem:[#allocation5 + $0x2a8] sm:$0xff]  ;;  %v325_v15 = vld [vmem:[#allocation5 + $0x2b8] sm:$0xff]  ;;  %v1727_v18 = vpack.c.bf16 %v273_v10, %v271_v8 }
  0x3c   :  { %v270_v17 = vld [vmem:[#allocation5 + $0x100] sm:$0xff]  ;;  %v272_v19 = vld [vmem:[#allocation5 + $0x110] sm:$0xff]  ;;  %v275_v20 = vld [vmem:[#allocation5 + $0x128] sm:$0xff]  ;;  %v2464_v22 = vpack.c.bf16 %v320_v13, %v318_v12  ;;  %v2467_v23 = vpack.c.bf16 %v325_v15, %v323_v14 }
  0x3d   :  { %1714 = vmatpush1.bf16.msra.mxu0 %v1713_v37  ;;  %1897 = vmatpush1.bf16.msra.mxu1 %v2452_v59  ;;  %v277_v21 = vld [vmem:[#allocation5 + $0x138] sm:$0xff]  ;;  %v322_v24 = vld [vmem:[#allocation5 + $0x2a0] sm:$0xff]  ;;  %v324_v25 = vld [vmem:[#allocation5 + $0x2b0] sm:$0xff]  ;;  %v1729_v29 = vpack.c.bf16 %v272_v19, %v270_v17 }
  0x3e   :  { %1716 = vmatprep.subr.bf16.mxu0 %v1715_v41  ;;  %1882 = vmatprep.subr.bf16.mxu1 %v2455_v63  ;;  %v47_v26 = vld [vmem:[#allocation2 + $0x8] sm:$0xff]  ;;  %v329_v28 = vld [vmem:[#allocation5 + $0x2d8] sm:$0xff]  ;;  %v1731_v30 = vpack.c.bf16 %v277_v21, %v275_v20  ;;  %v274_v31 = vld [vmem:[#allocation5 + $0x120] sm:$0xff]  ;;  %v2470_v35 = vpack.c.bf16 %v324_v25, %v322_v24 }
  0x3f   :  { %v327_v27 = vld [vmem:[#allocation5 + $0x2c8] sm:$0xff]  ;;  %442 = vmatprep.mubr.f32.mxu0 %v47_v26  ;;  %v276_v32 = vld [vmem:[#allocation5 + $0x130] sm:$0xff]  ;;  %v281_v37 = vld [vmem:[#allocation5 + $0x158] sm:$0xff] }
  0x40   :  { %v279_v34 = vld [vmem:[#allocation5 + $0x148] sm:$0xff]  ;;  %v2473_v38 = vpack.c.bf16 %v329_v28, %v327_v27  ;;  %v326_v39 = vld [vmem:[#allocation5 + $0x2c0] sm:$0xff]  ;;  %v328_v40 = vld [vmem:[#allocation5 + $0x2d0] sm:$0xff]  ;;  %v1733_v43 = vpack.c.bf16 %v276_v32, %v274_v31 }
  0x41   :  { %1718 = vmatpush1.bf16.msra.mxu0 %v1717_v53  ;;  %1898 = vmatpush1.bf16.msra.mxu1 %v2458_v9  ;;  %v331_v41 = vld [vmem:[#allocation5 + $0x2e8] sm:$0xff]  ;;  %v333_v42 = vld [vmem:[#allocation5 + $0x2f8] sm:$0xff]  ;;  %v1735_v45 = vpack.c.bf16 %v281_v37, %v279_v34  ;;  %v278_v46 = vld [vmem:[#allocation5 + $0x140] sm:$0xff]  ;;  %v2476_v50 = vpack.c.bf16 %v328_v40, %v326_v39 }
  0x42   :  { %1720 = vmatprep.subr.bf16.mxu0 %v1719_v57  ;;  %1883 = vmatprep.subr.bf16.mxu1 %v2461_v11  ;;  %v280_v47 = vld [vmem:[#allocation5 + $0x150] sm:$0xff]  ;;  %v283_v49 = vld [vmem:[#allocation5 + $0x168] sm:$0xff]  ;;  %v285_v51 = vld [vmem:[#allocation5 + $0x178] sm:$0xff]  ;;  %v2479_v52 = vpack.c.bf16 %v333_v42, %v331_v41 }
  0x43   :  { %v330_v53 = vld [vmem:[#allocation5 + $0x2e0] sm:$0xff]  ;;  %v332_v54 = vld [vmem:[#allocation5 + $0x2f0] sm:$0xff]  ;;  %v335_v55 = vld [vmem:[#allocation5 + $0x308] sm:$0xff]  ;;  %v1737_v58 = vpack.c.bf16 %v280_v47, %v278_v46  ;;  %v1739_v60 = vpack.c.bf16 %v285_v51, %v283_v49 }
  0x44   :  { %v337_v57 = vld [vmem:[#allocation5 + $0x318] sm:$0xff]  ;;  %v282_v61 = vld [vmem:[#allocation5 + $0x160] sm:$0xff]  ;;  %v284_v62 = vld [vmem:[#allocation5 + $0x170] sm:$0xff]  ;;  %v2482_v1 = vpack.c.bf16 %v332_v54, %v330_v53 }
  0x45   :  { %1722 = vmatpush1.bf16.msra.mxu0 %v1721_v2  ;;  %1899 = vmatpush1.bf16.msra.mxu1 %v2464_v22  ;;  %v287_v0 = vld [vmem:[#allocation5 + $0x188] sm:$0xff]  ;;  %v289_v2 = vld [vmem:[#allocation5 + $0x198] sm:$0xff]  ;;  %v2485_v3 = vpack.c.bf16 %v337_v57, %v335_v55  ;;  %v334_v4 = vld [vmem:[#allocation5 + $0x300] sm:$0xff]  ;;  %v1741_v8 = vpack.c.bf16 %v284_v62, %v282_v61 }
  0x46   :  { %1724 = vmatprep.subr.bf16.mxu0 %v1723_v5  ;;  %1884 = vmatprep.subr.bf16.mxu1 %v2467_v23  ;;  %v336_v5 = vld [vmem:[#allocation5 + $0x310] sm:$0xff]  ;;  %v339_v6 = vld [vmem:[#allocation5 + $0x328] sm:$0xff]  ;;  %v341_v7 = vld [vmem:[#allocation5 + $0x338] sm:$0xff]  ;;  %v1743_v10 = vpack.c.bf16 %v289_v2, %v287_v0 }
  0x47   :  { %v286_v12 = vld [vmem:[#allocation5 + $0x180] sm:$0xff]  ;;  %v288_v13 = vld [vmem:[#allocation5 + $0x190] sm:$0xff]  ;;  %v291_v14 = vld [vmem:[#allocation5 + $0x1a8] sm:$0xff]  ;;  %v2488_v15 = vpack.c.bf16 %v336_v5, %v334_v4  ;;  %v2491_v17 = vpack.c.bf16 %v341_v7, %v339_v6 }
  0x48   :  { %v340_v19 = vld [vmem:[#allocation5 + $0x330] sm:$0xff]  ;;  %v343_v20 = vld [vmem:[#allocation5 + $0x348] sm:$0xff]  ;;  %v345_v21 = vld [vmem:[#allocation5 + $0x358] sm:$0xff]  ;;  %v1745_v24 = vpack.c.bf16 %v288_v13, %v286_v12 }
  0x49   :  { %1726 = vmatpush1.bf16.msra.mxu0 %v1725_v16  ;;  %1900 = vmatpush1.bf16.msra.mxu1 %v2470_v35  ;;  %v293_v16 = vld [vmem:[#allocation5 + $0x1b8] sm:$0xff]  ;;  %v290_v25 = vld [vmem:[#allocation5 + $0x1a0] sm:$0xff]  ;;  %v292_v27 = vld [vmem:[#allocation5 + $0x1b0] sm:$0xff]  ;;  %v2497_v32 = vpack.c.bf16 %v345_v21, %v343_v20 }
  0x4a   :  { %1728 = vmatprep.subr.bf16.mxu0 %v1727_v18  ;;  %1885 = vmatprep.subr.bf16.mxu1 %v2473_v38  ;;  %v338_v18 = vld [vmem:[#allocation5 + $0x320] sm:$0xff]  ;;  %v1747_v26 = vpack.c.bf16 %v293_v16, %v291_v14  ;;  %v295_v28 = vld [vmem:[#allocation5 + $0x1c8] sm:$0xff]  ;;  %v297_v31 = vld [vmem:[#allocation5 + $0x1d8] sm:$0xff]  ;;  %v1749_v41 = vpack.c.bf16 %v292_v27, %v290_v25 }
  0x4b   :  { %v342_v34 = vld [vmem:[#allocation5 + $0x340] sm:$0xff]  ;;  %v344_v37 = vld [vmem:[#allocation5 + $0x350] sm:$0xff]  ;;  %v347_v39 = vld [vmem:[#allocation5 + $0x368] sm:$0xff]  ;;  %v1751_v42 = vpack.c.bf16 %v297_v31, %v295_v28 }
  0x4c   :  { %v349_v40 = vld [vmem:[#allocation5 + $0x378] sm:$0xff]  ;;  %v299_v46 = vld [vmem:[#allocation5 + $0x1e8] sm:$0xff]  ;;  %v2500_v47 = vpack.c.bf16 %v344_v37, %v342_v34  ;;  %v346_v53 = vld [vmem:[#allocation5 + $0x360] sm:$0xff] }
  0x4d   :  { %1730 = vmatpush1.bf16.msra.mxu0 %v1729_v29  ;;  %1901 = vmatpush1.bf16.msra.mxu1 %v2476_v50  ;;  %v2494_v29 = vpack.c.bf16 %v340_v19, %v338_v18  ;;  %v301_v49 = vld [vmem:[#allocation5 + $0x1f8] sm:$0xff]  ;;  %v2503_v51 = vpack.c.bf16 %v349_v40, %v347_v39  ;;  %v348_v54 = vld [vmem:[#allocation5 + $0x370] sm:$0xff]  ;;  %v351_v55 = vld [vmem:[#allocation5 + $0x388] sm:$0xff] }
  0x4e   :  { %1732 = vmatprep.subr.bf16.mxu0 %v1731_v30  ;;  %1886 = vmatprep.subr.bf16.mxu1 %v2479_v52  ;;  %v85_v30 = vld [vmem:[#allocation2 + $0x138] sm:$0xff]  ;;  %v298_v61 = vld [vmem:[#allocation5 + $0x1e0] sm:$0xff]  ;;  %v300_v62 = vld [vmem:[#allocation5 + $0x1f0] sm:$0xff]  ;;  %v2506_v0 = vpack.c.bf16 %v348_v54, %v346_v53 }
  0x4f   :  { %849 = vmatprep.mubr.f32.mxu1 %v85_v30  ;;  %v353_v57 = vld [vmem:[#allocation5 + $0x398] sm:$0xff]  ;;  %v350_v4 = vld [vmem:[#allocation5 + $0x380] sm:$0xff]  ;;  %v352_v5 = vld [vmem:[#allocation5 + $0x390] sm:$0xff] }
  0x50   :  { %v2509_v2 = vpack.c.bf16 %v353_v57, %v351_v55  ;;  %v355_v6 = vld [vmem:[#allocation5 + $0x3a8] sm:$0xff]  ;;  %v357_v7 = vld [vmem:[#allocation5 + $0x3b8] sm:$0xff]  ;;  %v354_v13 = vld [vmem:[#allocation5 + $0x3a0] sm:$0xff] }
  0x51   :  { %1734 = vmatpush1.bf16.msra.mxu0 %v1733_v43  ;;  %1902 = vmatpush1.bf16.msra.mxu1 %v2482_v1  ;;  %v294_v43 = vld [vmem:[#allocation5 + $0x1c0] sm:$0xff]  ;;  %v2515_v12 = vpack.c.bf16 %v357_v7, %v355_v6  ;;  %v356_v14 = vld [vmem:[#allocation5 + $0x3b0] sm:$0xff]  ;;  %v359_v16 = vld [vmem:[#allocation5 + $0x3c8] sm:$0xff] }
  0x52   :  { %1736 = vmatprep.subr.bf16.mxu0 %v1735_v45  ;;  %1887 = vmatprep.subr.bf16.mxu1 %v2485_v3  ;;  %v296_v45 = vld [vmem:[#allocation5 + $0x1d0] sm:$0xff]  ;;  %v361_v18 = vld [vmem:[#allocation5 + $0x3d8] sm:$0xff]  ;;  %v46_v19 = vld [vmem:[#allocation2] sm:$0xff]  ;;  %v2518_v21 = vpack.c.bf16 %v356_v14, %v354_v13 }
  0x53   :  { %v51_v20 = vld [vmem:[#allocation2 + $0x28] sm:$0xff]  ;;  %v358_v25 = vld [vmem:[#allocation5 + $0x3c0] sm:$0xff]  ;;  %v365_v28 = vld [vmem:[#allocation5 + $0x3f8] sm:$0xff] }
  0x54   :  { %v363_v27 = vld [vmem:[#allocation5 + $0x3e8] sm:$0xff]  ;;  %v50_v30 = vld [vmem:[#allocation2 + $0x20] sm:$0xff]  ;;  %v364_v39 = vld [vmem:[#allocation5 + $0x3f0] sm:$0xff] }
  0x55   :  { %1738 = vmatpush1.bf16.msra.mxu0 %v1737_v58  ;;  %1903 = vmatpush1.bf16.msra.mxu1 %v2488_v15  ;;  %v1753_v58 = vpack.c.bf16 %v296_v45, %v294_v43  ;;  %v55_v31 = vld [vmem:[#allocation2 + $0x48] sm:$0xff]  ;;  %v362_v37 = vld [vmem:[#allocation5 + $0x3e0] sm:$0xff]  ;;  %v84_v43 = vld [vmem:[#allocation2 + $0x130] sm:$0xff] }
  0x56   :  { %1740 = vmatprep.subr.bf16.mxu0 %v1739_v60  ;;  %1888 = vmatprep.subr.bf16.mxu1 %v2491_v17  ;;  %v1755_v60 = vpack.c.bf16 %v301_v49, %v299_v46  ;;  %v54_v40 = vld [vmem:[#allocation2 + $0x40] sm:$0xff]  ;;  %v67_v46 = vld [vmem:[#allocation2 + $0xa8] sm:$0xff]  ;;  %v93_v49 = vld [vmem:[#allocation2 + $0x178] sm:$0xff] }
  0x57   :  { %v62_v45 = vld [vmem:[#allocation2 + $0x80] sm:$0xff]  ;;  %v71_v53 = vld [vmem:[#allocation2 + $0xc8] sm:$0xff]  ;;  %v97_v54 = vld [vmem:[#allocation2 + $0x198] sm:$0xff] }
  0x58   :  { %v70_v55 = vld [vmem:[#allocation2 + $0xc0] sm:$0xff]  ;;  %v96_v57 = vld [vmem:[#allocation2 + $0x190] sm:$0xff] }
  0x59   :  { %1742 = vmatpush1.bf16.msra.mxu0 %v1741_v8  ;;  %1904 = vmatpush1.bf16.msra.mxu1 %v2494_v29  ;;  %v1757_v8 = vpack.c.bf16 %v300_v62, %v298_v61  ;;  %v78_v61 = vld [vmem:[#allocation2 + $0x100] sm:$0xff]  ;;  %v104_v62 = vld [vmem:[#allocation2 + $0x1d0] sm:$0xff] }
  0x5a   :  { %1744 = vmatprep.subr.bf16.mxu0 %v1743_v10  ;;  %1889 = vmatprep.subr.bf16.mxu1 %v2497_v32  ;;  %v2512_v10 = vpack.c.bf16 %v352_v5, %v350_v4  ;;  %v82_v4 = vld [vmem:[#allocation2 + $0x120] sm:$0xff]  ;;  %v108_v5 = vld [vmem:[#allocation2 + $0x1f0] sm:$0xff] }
  0x5b   :  { %v86_v6 = vld [vmem:[#allocation2 + $0x140] sm:$0xff]  ;;  %v112_v7 = vld [vmem:[#allocation2 + $0x210] sm:$0xff] }
  0x5c   :  { %v116_v13 = vld [vmem:[#allocation2 + $0x230] sm:$0xff]  ;;  %v94_v14 = vld [vmem:[#allocation2 + $0x180] sm:$0xff] }
  0x5d   :  { %1746 = vmatpush1.bf16.msra.mxu0 %v1745_v24  ;;  %1905 = vmatpush1.bf16.msra.mxu1 %v2500_v47  ;;  %v2522_v24 = vpack.c.bf16 %v361_v18, %v359_v16  ;;  %v120_v16 = vld [vmem:[#allocation2 + $0x250] sm:$0xff]  ;;  %v98_v18 = vld [vmem:[#allocation2 + $0x1a0] sm:$0xff] }
  0x5e   :  { %1748 = vmatprep.subr.bf16.mxu0 %v1747_v26  ;;  %1890 = vmatprep.subr.bf16.mxu1 %v2503_v51  ;;  %v360_v26 = vld [vmem:[#allocation5 + $0x3d0] sm:$0xff] }
  0x5f   :  { %v2526_v34 = vpack.c.bf16 %v360_v26, %v358_v25  ;;  %v128_v25 = vld [vmem:[#allocation2 + $0x290] sm:$0xff]  ;;  %v106_v26 = vld [vmem:[#allocation2 + $0x1e0] sm:$0xff] }
  0x61   :  { %1750 = vmatpush1.bf16.msra.mxu0 %v1749_v41  ;;  %1906 = vmatpush1.bf16.msra.mxu1 %v2506_v0  ;;  %v59_v41 = vld [vmem:[#allocation2 + $0x68] sm:$0xff] }
  0x62   :  { %1752 = vmatprep.subr.bf16.mxu0 %v1751_v42  ;;  %1891 = vmatprep.subr.bf16.mxu1 %v2509_v2  ;;  %v63_v42 = vld [vmem:[#allocation2 + $0x88] sm:$0xff] }
  0x65   :  { %1754 = vmatpush1.bf16.msra.mxu0 %v1753_v58  ;;  %1907 = vmatpush1.bf16.msra.mxu1 %v2512_v10  ;;  %v74_v58 = vld [vmem:[#allocation2 + $0xe0] sm:$0xff] }
  0x66   :  { %1756 = vmatprep.subr.bf16.mxu0 %v1755_v60  ;;  %1892 = vmatprep.subr.bf16.mxu1 %v2515_v12  ;;  %v100_v60 = vld [vmem:[#allocation2 + $0x1b0] sm:$0xff] }
  0x69   :  { %1758 = vmatpush1.bf16.msra.mxu0 %v1757_v8  ;;  %1908 = vmatpush1.bf16.msra.mxu1 %v2518_v21  ;;  %v90_v8 = vld [vmem:[#allocation2 + $0x160] sm:$0xff] }
  0x6a   :  { %1760 = vmatprep.subr.bf16.mxu0 %v2438_v33  ;;  %1893 = vmatprep.subr.bf16.mxu1 %v2522_v24  ;;  %v2530_v33 = vpack.c.bf16 %v365_v28, %v363_v27  ;;  %v132_v27 = vld [vmem:[#allocation2 + $0x2b0] sm:$0xff]  ;;  %v110_v28 = vld [vmem:[#allocation2 + $0x200] sm:$0xff] }
  0x6c   :  { %443 = vmatmul.mubr.f32.vlgmr.msra.gmra.mrb[0].mxu0 %v46_v19  ;;  %v124_v19 = vld [vmem:[#allocation2 + $0x270] sm:$0xff] }
  0x6d   :  { %448 = vmatprep.mubr.f32.mxu0 %v51_v20  ;;  %1762 = vmatpush1.bf16.msra.mxu0 %v2440_v36  ;;  %v2534_v36 = vpack.c.bf16 %v364_v39, %v362_v37  ;;  %v102_v20 = vld [vmem:[#allocation2 + $0x1c0] sm:$0xff]  ;;  %v119_v37 = vld [vmem:[#allocation2 + $0x248] sm:$0xff]  ;;  %v145_v39 = vld [vmem:[#allocation2 + $0x318] sm:$0xff] }
  0x6e   :  { %1764 = vmatprep.subr.bf16.mxu0 %v2444_v44  ;;  %1909 = vmatpush1.bf16.msra.mxu1 %v2526_v34  ;;  %v58_v44 = vld [vmem:[#allocation2 + $0x60] sm:$0xff] }
  0x6f   :  { %1894 = vmatprep.subr.bf16.mxu1 %v2530_v33 }
  0x70   :  { %449 = vmatmul.mubr.f32.gmra.mrb[2].mxu0 %v50_v30  ;;  %v136_v30 = vld [vmem:[#allocation2 + $0x2d0] sm:$0xff] }
  0x71   :  { %454 = vmatprep.mubr.f32.mxu0 %v55_v31  ;;  %1766 = vmatpush1.bf16.msra.mxu0 %v2446_v48  ;;  %v89_v48 = vld [vmem:[#allocation2 + $0x158] sm:$0xff]  ;;  %v114_v31 = vld [vmem:[#allocation2 + $0x220] sm:$0xff] }
  0x72   :  { %1768 = vmatprep.subr.bf16.mxu0 %v2449_v56  ;;  %1910 = vmatpush1.bf16.msra.mxu1 %v2534_v36  ;;  %v88_v56 = vld [vmem:[#allocation2 + $0x150] sm:$0xff] }
  0x74   :  { %455 = vmatmul.mubr.f32.gmra.mrb[4].mxu0 %v54_v40  ;;  %v123_v40 = vld [vmem:[#allocation2 + $0x268] sm:$0xff] }
  0x75   :  { %460 = vmatprep.mubr.f32.mxu0 %v59_v41  ;;  %1770 = vmatpush1.bf16.msra.mxu0 %v2452_v59  ;;  %v66_v59 = vld [vmem:[#allocation2 + $0xa0] sm:$0xff]  ;;  %v144_v41 = vld [vmem:[#allocation2 + $0x310] sm:$0xff] }
  0x76   :  { %1772 = vmatprep.subr.bf16.mxu0 %v2455_v63  ;;  %850 = vmatmul.mubr.f32.vlgmr.msra.gmra.mrb[0].mxu1 %v84_v43  ;;  %v92_v63 = vld [vmem:[#allocation2 + $0x170] sm:$0xff] }
  0x77   :  { %855 = vmatprep.mubr.f32.mxu1 %v89_v48  ;;  %v148_v43 = vld [vmem:[#allocation2 + $0x330] sm:$0xff]  ;;  %v153_v48 = vld [vmem:[#allocation2 + $0x358] sm:$0xff] }
  0x78   :  { %461 = vmatmul.mubr.f32.gmra.mrb[6].mxu0 %v58_v44  ;;  %v149_v44 = vld [vmem:[#allocation2 + $0x338] sm:$0xff] }
  0x79   :  { %466 = vmatprep.mubr.f32.mxu0 %v63_v42  ;;  %1774 = vmatpush1.bf16.msra.mxu0 %v2458_v9  ;;  %v75_v9 = vld [vmem:[#allocation2 + $0xe8] sm:$0xff] }
  0x7a   :  { %1776 = vmatprep.subr.bf16.mxu0 %v2461_v11  ;;  %856 = vmatmul.mubr.f32.gmra.mrb[2].mxu1 %v88_v56  ;;  %v101_v11 = vld [vmem:[#allocation2 + $0x1b8] sm:$0xff]  ;;  %v127_v42 = vld [vmem:[#allocation2 + $0x288] sm:$0xff]  ;;  %v152_v56 = vld [vmem:[#allocation2 + $0x350] sm:$0xff] }
  0x7b   :  { %861 = vmatprep.mubr.f32.mxu1 %v93_v49  ;;  %v157_v49 = vld [vmem:[#allocation2 + $0x378] sm:$0xff] }
  0x7c   :  { %467 = vmatmul.mubr.f32.gmra.mrb[8].mxu0 %v62_v45  ;;  %v126_v45 = vld [vmem:[#allocation2 + $0x280] sm:$0xff] }
  0x7d   :  { %472 = vmatprep.mubr.f32.mxu0 %v67_v46  ;;  %1778 = vmatpush1.bf16.msra.mxu0 %v2464_v22  ;;  %v79_v22 = vld [vmem:[#allocation2 + $0x108] sm:$0xff] }
  0x7e   :  { %1780 = vmatprep.subr.bf16.mxu0 %v2467_v23  ;;  %862 = vmatmul.mubr.f32.gmra.mrb[4].mxu1 %v92_v63  ;;  %v105_v23 = vld [vmem:[#allocation2 + $0x1d8] sm:$0xff]  ;;  %v131_v46 = vld [vmem:[#allocation2 + $0x2a8] sm:$0xff]  ;;  %v156_v63 = vld [vmem:[#allocation2 + $0x370] sm:$0xff] }
  0x7f   :  { %867 = vmatprep.mubr.f32.mxu1 %v97_v54  ;;  %v161_v54 = vld [vmem:[#allocation2 + $0x398] sm:$0xff] }
  0x80   :  { %473 = vmatmul.mubr.f32.gmra.mrb[10].mxu0 %v66_v59  ;;  %v130_v59 = vld [vmem:[#allocation2 + $0x2a0] sm:$0xff] }
  0x81   :  { %478 = vmatprep.mubr.f32.mxu0 %v71_v53  ;;  %1782 = vmatpush1.bf16.msra.mxu0 %v2470_v35  ;;  %v83_v35 = vld [vmem:[#allocation2 + $0x128] sm:$0xff] }
  0x82   :  { %1784 = vmatprep.subr.bf16.mxu0 %v2473_v38  ;;  %868 = vmatmul.mubr.f32.gmra.mrb[6].mxu1 %v96_v57  ;;  %v109_v38 = vld [vmem:[#allocation2 + $0x1f8] sm:$0xff]  ;;  %v135_v53 = vld [vmem:[#allocation2 + $0x2c8] sm:$0xff]  ;;  %v160_v57 = vld [vmem:[#allocation2 + $0x390] sm:$0xff] }
  0x83   :  { %873 = vmatprep.mubr.f32.mxu1 %v101_v11  ;;  %v165_v11 = vld [vmem:[#allocation2 + $0x3b8] sm:$0xff] }
  0x84   :  { %479 = vmatmul.mubr.f32.gmra.mrb[12].mxu0 %v70_v55  ;;  %v134_v55 = vld [vmem:[#allocation2 + $0x2c0] sm:$0xff] }
  0x85   :  { %484 = vmatprep.mubr.f32.mxu0 %v75_v9  ;;  %1786 = vmatpush1.bf16.msra.mxu0 %v2476_v50  ;;  %v87_v50 = vld [vmem:[#allocation2 + $0x148] sm:$0xff] }
  0x86   :  { %1788 = vmatprep.subr.bf16.mxu0 %v2479_v52  ;;  %874 = vmatmul.mubr.f32.gmra.mrb[8].mxu1 %v100_v60  ;;  %v113_v52 = vld [vmem:[#allocation2 + $0x218] sm:$0xff]  ;;  %v139_v9 = vld [vmem:[#allocation2 + $0x2e8] sm:$0xff]  ;;  %v164_v60 = vld [vmem:[#allocation2 + $0x3b0] sm:$0xff] }
  0x87   :  { %879 = vmatprep.mubr.f32.mxu1 %v105_v23  ;;  %v169_v23 = vld [vmem:[#allocation2 + $0x3d8] sm:$0xff] }
  0x88   :  { %485 = vmatmul.mubr.f32.gmra.mrb[14].mxu0 %v74_v58  ;;  %v138_v58 = vld [vmem:[#allocation2 + $0x2e0] sm:$0xff] }
  0x89   :  { %490 = vmatprep.mubr.f32.mxu0 %v79_v22  ;;  %1790 = vmatpush1.bf16.msra.mxu0 %v2482_v1  ;;  %v91_v1 = vld [vmem:[#allocation2 + $0x168] sm:$0xff] }
  0x8a   :  { %1792 = vmatprep.subr.bf16.mxu0 %v2485_v3  ;;  %880 = vmatmul.mubr.f32.gmra.mrb[10].mxu1 %v104_v62  ;;  %v117_v3 = vld [vmem:[#allocation2 + $0x238] sm:$0xff]  ;;  %v143_v22 = vld [vmem:[#allocation2 + $0x308] sm:$0xff]  ;;  %v168_v62 = vld [vmem:[#allocation2 + $0x3d0] sm:$0xff] }
  0x8b   :  { %885 = vmatprep.mubr.f32.mxu1 %v109_v38  ;;  %v173_v38 = vld [vmem:[#allocation2 + $0x3f8] sm:$0xff] }
  0x8c   :  { %491 = vmatmul.mubr.f32.gmra.mrb[16].mxu0 %v78_v61  ;;  %v142_v61 = vld [vmem:[#allocation2 + $0x300] sm:$0xff] }
  0x8d   :  { %496 = vmatprep.mubr.f32.mxu0 %v83_v35  ;;  %1794 = vmatpush1.bf16.msra.mxu0 %v2488_v15  ;;  %v95_v15 = vld [vmem:[#allocation2 + $0x188] sm:$0xff] }
  0x8e   :  { %1796 = vmatprep.subr.bf16.mxu0 %v2491_v17  ;;  %886 = vmatmul.mubr.f32.gmra.mrb[12].mxu1 %v108_v5  ;;  %v121_v17 = vld [vmem:[#allocation2 + $0x258] sm:$0xff]  ;;  %v147_v35 = vld [vmem:[#allocation2 + $0x328] sm:$0xff]  ;;  %v172_v5 = vld [vmem:[#allocation2 + $0x3f0] sm:$0xff] }
  0x8f   :  { %891 = vmatprep.mubr.f32.mxu1 %v113_v52  ;;  %v177_v52 = vld [vmem:[#allocation2 + $0x418] sm:$0xff] }
  0x90   :  { %497 = vmatmul.mubr.f32.gmra.mrb[18].mxu0 %v82_v4  ;;  %v146_v4 = vld [vmem:[#allocation2 + $0x320] sm:$0xff] }
  0x91   :  { %502 = vmatprep.mubr.f32.mxu0 %v87_v50  ;;  %1798 = vmatpush1.bf16.msra.mxu0 %v2494_v29  ;;  %v99_v29 = vld [vmem:[#allocation2 + $0x1a8] sm:$0xff] }
  0x92   :  { %1800 = vmatprep.subr.bf16.mxu0 %v2497_v32  ;;  %892 = vmatmul.mubr.f32.gmra.mrb[14].mxu1 %v112_v7  ;;  %v125_v32 = vld [vmem:[#allocation2 + $0x278] sm:$0xff]  ;;  %v151_v50 = vld [vmem:[#allocation2 + $0x348] sm:$0xff]  ;;  %v176_v7 = vld [vmem:[#allocation2 + $0x410] sm:$0xff] }
  0x93   :  { %897 = vmatprep.mubr.f32.mxu1 %v117_v3  ;;  %v181_v3 = vld [vmem:[#allocation2 + $0x438] sm:$0xff] }
  0x94   :  { %503 = vmatmul.mubr.f32.gmra.mrb[20].mxu0 %v86_v6  ;;  %v150_v6 = vld [vmem:[#allocation2 + $0x340] sm:$0xff] }
  0x95   :  { %508 = vmatprep.mubr.f32.mxu0 %v91_v1  ;;  %1802 = vmatpush1.bf16.msra.mxu0 %v2500_v47  ;;  %v103_v47 = vld [vmem:[#allocation2 + $0x1c8] sm:$0xff] }
  0x96   :  { %1804 = vmatprep.subr.bf16.mxu0 %v2503_v51  ;;  %898 = vmatmul.mubr.f32.gmra.mrb[16].mxu1 %v116_v13  ;;  %v129_v51 = vld [vmem:[#allocation2 + $0x298] sm:$0xff]  ;;  %v155_v1 = vld [vmem:[#allocation2 + $0x368] sm:$0xff]  ;;  %v180_v13 = vld [vmem:[#allocation2 + $0x430] sm:$0xff] }
  0x97   :  { %903 = vmatprep.mubr.f32.mxu1 %v121_v17  ;;  %v185_v17 = vld [vmem:[#allocation2 + $0x458] sm:$0xff] }
  0x98   :  { %509 = vmatmul.mubr.f32.gmra.mrb[22].mxu0 %v90_v8  ;;  %v154_v8 = vld [vmem:[#allocation2 + $0x360] sm:$0xff] }
  0x99   :  { %514 = vmatprep.mubr.f32.mxu0 %v95_v15  ;;  %1806 = vmatpush1.bf16.msra.mxu0 %v2506_v0  ;;  %v107_v0 = vld [vmem:[#allocation2 + $0x1e8] sm:$0xff] }
  0x9a   :  { %1808 = vmatprep.subr.bf16.mxu0 %v2509_v2  ;;  %904 = vmatmul.mubr.f32.gmra.mrb[18].mxu1 %v120_v16  ;;  %v133_v2 = vld [vmem:[#allocation2 + $0x2b8] sm:$0xff]  ;;  %v159_v15 = vld [vmem:[#allocation2 + $0x388] sm:$0xff]  ;;  %v184_v16 = vld [vmem:[#allocation2 + $0x450] sm:$0xff] }
  0x9b   :  { %909 = vmatprep.mubr.f32.mxu1 %v125_v32  ;;  %v189_v32 = vld [vmem:[#allocation2 + $0x478] sm:$0xff] }
  0x9c   :  { %515 = vmatmul.mubr.f32.gmra.mrb[24].mxu0 %v94_v14  ;;  %v158_v14 = vld [vmem:[#allocation2 + $0x380] sm:$0xff] }
  0x9d   :  { %520 = vmatprep.mubr.f32.mxu0 %v99_v29  ;;  %1810 = vmatpush1.bf16.msra.mxu0 %v2512_v10  ;;  %v111_v10 = vld [vmem:[#allocation2 + $0x208] sm:$0xff] }
  0x9e   :  { %1812 = vmatprep.subr.bf16.mxu0 %v2515_v12  ;;  %910 = vmatmul.mubr.f32.gmra.mrb[20].mxu1 %v124_v19  ;;  %v137_v12 = vld [vmem:[#allocation2 + $0x2d8] sm:$0xff]  ;;  %v163_v29 = vld [vmem:[#allocation2 + $0x3a8] sm:$0xff]  ;;  %v188_v19 = vld [vmem:[#allocation2 + $0x470] sm:$0xff] }
  0x9f   :  { %915 = vmatprep.mubr.f32.mxu1 %v129_v51  ;;  %v193_v51 = vld [vmem:[#allocation2 + $0x498] sm:$0xff] }
  0xa0   :  { %521 = vmatmul.mubr.f32.gmra.mrb[26].mxu0 %v98_v18  ;;  %v162_v18 = vld [vmem:[#allocation2 + $0x3a0] sm:$0xff] }
  0xa1   :  { %526 = vmatprep.mubr.f32.mxu0 %v103_v47  ;;  %1814 = vmatpush1.bf16.msra.mxu0 %v2518_v21  ;;  %v115_v21 = vld [vmem:[#allocation2 + $0x228] sm:$0xff] }
  0xa2   :  { %1816 = vmatprep.subr.bf16.mxu0 %v2522_v24  ;;  %916 = vmatmul.mubr.f32.gmra.mrb[22].mxu1 %v128_v25  ;;  %v141_v24 = vld [vmem:[#allocation2 + $0x2f8] sm:$0xff]  ;;  %v167_v47 = vld [vmem:[#allocation2 + $0x3c8] sm:$0xff]  ;;  %v192_v25 = vld [vmem:[#allocation2 + $0x490] sm:$0xff] }
  0xa3   :  { %921 = vmatprep.mubr.f32.mxu1 %v133_v2  ;;  %v197_v2 = vld [vmem:[#allocation2 + $0x4b8] sm:$0xff] }
  0xa4   :  { %527 = vmatmul.mubr.f32.gmra.mrb[28].mxu0 %v102_v20  ;;  %v166_v20 = vld [vmem:[#allocation2 + $0x3c0] sm:$0xff] }
  0xa5   :  { %532 = vmatprep.mubr.f32.mxu0 %v107_v0  ;;  %1818 = vmatpush1.bf16.msra.mxu0 %v2526_v34  ;;  %v140_v34 = vld [vmem:[#allocation2 + $0x2f0] sm:$0xff]  ;;  %v171_v0 = vld [vmem:[#allocation2 + $0x3e8] sm:$0xff] }
  0xa6   :  { %1820 = vmatprep.subr.bf16.mxu0 %v2530_v33  ;;  %922 = vmatmul.mubr.f32.gmra.mrb[24].mxu1 %v132_v27  ;;  %v118_v33 = vld [vmem:[#allocation2 + $0x240] sm:$0xff]  ;;  %v196_v27 = vld [vmem:[#allocation2 + $0x4b0] sm:$0xff] }
  0xa7   :  { %927 = vmatprep.mubr.f32.mxu1 %v137_v12  ;;  %v201_v12 = vld [vmem:[#allocation2 + $0x4d8] sm:$0xff] }
  0xa8   :  { %533 = vmatmul.mubr.f32.gmra.mrb[30].mxu0 %v106_v26  ;;  %v170_v26 = vld [vmem:[#allocation2 + $0x3e0] sm:$0xff] }
  0xa9   :  { %538 = vmatprep.mubr.f32.mxu0 %v111_v10  ;;  %1822 = vmatpush1.bf16.msra.mxu0 %v2534_v36  ;;  %v122_v36 = vld [vmem:[#allocation2 + $0x260] sm:$0xff]  ;;  %v175_v10 = vld [vmem:[#allocation2 + $0x408] sm:$0xff] }
  0xaa   :  { %928 = vmatmul.mubr.f32.gmra.mrb[26].mxu1 %v136_v30  ;;  %v200_v30 = vld [vmem:[#allocation2 + $0x4d0] sm:$0xff] }
  0xab   :  { %933 = vmatprep.mubr.f32.mxu1 %v141_v24  ;;  %v205_v24 = vld [vmem:[#allocation2 + $0x4f8] sm:$0xff] }
  0xac   :  { %539 = vmatmul.mubr.f32.gmra.mrb[32].mxu0 %v110_v28  ;;  %v174_v28 = vld [vmem:[#allocation2 + $0x400] sm:$0xff] }
  0xad   :  { %544 = vmatprep.mubr.f32.mxu0 %v115_v21  ;;  %v179_v21 = vld [vmem:[#allocation2 + $0x428] sm:$0xff] }
  0xae   :  { %934 = vmatmul.mubr.f32.gmra.mrb[28].mxu1 %v140_v34  ;;  %v204_v34 = vld [vmem:[#allocation2 + $0x4f0] sm:$0xff] }
  0xaf   :  { %939 = vmatprep.mubr.f32.mxu1 %v145_v39  ;;  %v209_v39 = vld [vmem:[#allocation2 + $0x518] sm:$0xff] }
  0xb0   :  { %545 = vmatmul.mubr.f32.gmra.mrb[34].mxu0 %v114_v31  ;;  %v178_v31 = vld [vmem:[#allocation2 + $0x420] sm:$0xff] }
  0xb1   :  { %550 = vmatprep.mubr.f32.mxu0 %v119_v37  ;;  %v183_v37 = vld [vmem:[#allocation2 + $0x448] sm:$0xff] }
  0xb2   :  { %940 = vmatmul.mubr.f32.gmra.mrb[30].mxu1 %v144_v41  ;;  %v208_v41 = vld [vmem:[#allocation2 + $0x510] sm:$0xff] }
  0xb3   :  { %945 = vmatprep.mubr.f32.mxu1 %v149_v44  ;;  %v213_v44 = vld [vmem:[#allocation2 + $0x538] sm:$0xff] }
  0xb4   :  { %551 = vmatmul.mubr.f32.gmra.mrb[36].mxu0 %v118_v33  ;;  %v182_v33 = vld [vmem:[#allocation2 + $0x440] sm:$0xff] }
  0xb5   :  { %556 = vmatprep.mubr.f32.mxu0 %v123_v40  ;;  %v187_v40 = vld [vmem:[#allocation2 + $0x468] sm:$0xff] }
  0xb6   :  { %946 = vmatmul.mubr.f32.gmra.mrb[32].mxu1 %v148_v43  ;;  %v212_v43 = vld [vmem:[#allocation2 + $0x530] sm:$0xff] }
  0xb7   :  { %951 = vmatprep.mubr.f32.mxu1 %v153_v48  ;;  %v217_v48 = vld [vmem:[#allocation2 + $0x558] sm:$0xff] }
  0xb8   :  { %557 = vmatmul.mubr.f32.gmra.mrb[38].mxu0 %v122_v36  ;;  %v186_v36 = vld [vmem:[#allocation2 + $0x460] sm:$0xff] }
  0xb9   :  { %562 = vmatprep.mubr.f32.mxu0 %v127_v42  ;;  %v191_v42 = vld [vmem:[#allocation2 + $0x488] sm:$0xff] }
  0xba   :  { %952 = vmatmul.mubr.f32.gmra.mrb[34].mxu1 %v152_v56  ;;  %v216_v56 = vld [vmem:[#allocation2 + $0x550] sm:$0xff] }
  0xbb   :  { %957 = vmatprep.mubr.f32.mxu1 %v157_v49  ;;  %v221_v49 = vld [vmem:[#allocation2 + $0x578] sm:$0xff] }
  0xbc   :  { %563 = vmatmul.mubr.f32.gmra.mrb[40].mxu0 %v126_v45  ;;  %v190_v45 = vld [vmem:[#allocation2 + $0x480] sm:$0xff] }
  0xbd   :  { %568 = vmatprep.mubr.f32.mxu0 %v131_v46  ;;  %v195_v46 = vld [vmem:[#allocation2 + $0x4a8] sm:$0xff] }
  0xbe   :  { %958 = vmatmul.mubr.f32.gmra.mrb[36].mxu1 %v156_v63  ;;  %v220_v63 = vld [vmem:[#allocation2 + $0x570] sm:$0xff] }
  0xbf   :  { %963 = vmatprep.mubr.f32.mxu1 %v161_v54  ;;  %v225_v54 = vld [vmem:[#allocation2 + $0x598] sm:$0xff] }
  0xc0   :  { %569 = vmatmul.mubr.f32.gmra.mrb[42].mxu0 %v130_v59  ;;  %v194_v59 = vld [vmem:[#allocation2 + $0x4a0] sm:$0xff] }
  0xc1   :  { %574 = vmatprep.mubr.f32.mxu0 %v135_v53  ;;  %v199_v53 = vld [vmem:[#allocation2 + $0x4c8] sm:$0xff] }
  0xc2   :  { %964 = vmatmul.mubr.f32.gmra.mrb[38].mxu1 %v160_v57  ;;  %v224_v57 = vld [vmem:[#allocation2 + $0x590] sm:$0xff] }
  0xc3   :  { %969 = vmatprep.mubr.f32.mxu1 %v165_v11  ;;  %v229_v11 = vld [vmem:[#allocation2 + $0x5b8] sm:$0xff] }
  0xc4   :  { %575 = vmatmul.mubr.f32.gmra.mrb[44].mxu0 %v134_v55  ;;  %v198_v55 = vld [vmem:[#allocation2 + $0x4c0] sm:$0xff] }
  0xc5   :  { %580 = vmatprep.mubr.f32.mxu0 %v139_v9  ;;  %v203_v9 = vld [vmem:[#allocation2 + $0x4e8] sm:$0xff] }
  0xc6   :  { %970 = vmatmul.mubr.f32.gmra.mrb[40].mxu1 %v164_v60  ;;  %v228_v60 = vld [vmem:[#allocation2 + $0x5b0] sm:$0xff] }
  0xc7   :  { %975 = vmatprep.mubr.f32.mxu1 %v169_v23  ;;  %v233_v23 = vld [vmem:[#allocation2 + $0x5d8] sm:$0xff] }
  0xc8   :  { %581 = vmatmul.mubr.f32.gmra.mrb[46].mxu0 %v138_v58  ;;  %v202_v58 = vld [vmem:[#allocation2 + $0x4e0] sm:$0xff] }
  0xc9   :  { %586 = vmatprep.mubr.f32.mxu0 %v143_v22  ;;  %v207_v22 = vld [vmem:[#allocation2 + $0x508] sm:$0xff] }
  0xca   :  { %976 = vmatmul.mubr.f32.gmra.mrb[42].mxu1 %v168_v62  ;;  %v232_v62 = vld [vmem:[#allocation2 + $0x5d0] sm:$0xff] }
  0xcb   :  { %981 = vmatprep.mubr.f32.mxu1 %v173_v38  ;;  %v237_v38 = vld [vmem:[#allocation2 + $0x5f8] sm:$0xff] }
  0xcc   :  { %587 = vmatmul.mubr.f32.gmra.mrb[48].mxu0 %v142_v61  ;;  %v206_v61 = vld [vmem:[#allocation2 + $0x500] sm:$0xff] }
  0xcd   :  { %592 = vmatprep.mubr.f32.mxu0 %v147_v35  ;;  %v211_v35 = vld [vmem:[#allocation2 + $0x528] sm:$0xff] }
  0xce   :  { %982 = vmatmul.mubr.f32.gmra.mrb[44].mxu1 %v172_v5  ;;  %v236_v5 = vld [vmem:[#allocation2 + $0x5f0] sm:$0xff] }
  0xcf   :  { %987 = vmatprep.mubr.f32.mxu1 %v177_v52  ;;  %v214_v52 = vld [vmem:[#allocation2 + $0x540] sm:$0xff] }
  0xd0   :  { %593 = vmatmul.mubr.f32.gmra.mrb[50].mxu0 %v146_v4  ;;  %v210_v4 = vld [vmem:[#allocation2 + $0x520] sm:$0xff] }
  0xd1   :  { %598 = vmatprep.mubr.f32.mxu0 %v151_v50  ;;  %v215_v50 = vld [vmem:[#allocation2 + $0x548] sm:$0xff] }
  0xd2   :  { %988 = vmatmul.mubr.f32.gmra.mrb[46].mxu1 %v176_v7  ;;  %v223_v7 = vld [vmem:[#allocation2 + $0x588] sm:$0xff] }
  0xd3   :  { %993 = vmatprep.mubr.f32.mxu1 %v181_v3  ;;  %v222_v3 = vld [vmem:[#allocation2 + $0x580] sm:$0xff] }
  0xd4   :  { %599 = vmatmul.mubr.f32.gmra.mrb[52].mxu0 %v150_v6  ;;  %v219_v6 = vld [vmem:[#allocation2 + $0x568] sm:$0xff] }
  0xd5   :  { %604 = vmatprep.mubr.f32.mxu0 %v155_v1  ;;  %v218_v1 = vld [vmem:[#allocation2 + $0x560] sm:$0xff] }
  0xd6   :  { %994 = vmatmul.mubr.f32.gmra.mrb[48].mxu1 %v180_v13  ;;  %v231_v13 = vld [vmem:[#allocation2 + $0x5c8] sm:$0xff] }
  0xd7   :  { %999 = vmatprep.mubr.f32.mxu1 %v185_v17  ;;  %v230_v17 = vld [vmem:[#allocation2 + $0x5c0] sm:$0xff] }
  0xd8   :  { %605 = vmatmul.mubr.f32.gmra.mrb[54].mxu0 %v154_v8  ;;  %v227_v8 = vld [vmem:[#allocation2 + $0x5a8] sm:$0xff] }
  0xd9   :  { %610 = vmatprep.mubr.f32.mxu0 %v159_v15  ;;  %v226_v15 = vld [vmem:[#allocation2 + $0x5a0] sm:$0xff] }
  0xda   :  { %1000 = vmatmul.mubr.f32.gmra.mrb[50].mxu1 %v184_v16  ;;  %v49_v16 = vld [vmem:[#allocation2 + $0x18] sm:$0xff] }
  0xdb   :  { %1005 = vmatprep.mubr.f32.mxu1 %v189_v32  ;;  %v48_v32 = vld [vmem:[#allocation2 + $0x10] sm:$0xff] }
  0xdc   :  { %611 = vmatmul.mubr.f32.gmra.mrb[56].mxu0 %v158_v14  ;;  %v235_v14 = vld [vmem:[#allocation2 + $0x5e8] sm:$0xff] }
  0xdd   :  { %616 = vmatprep.mubr.f32.mxu0 %v163_v29  ;;  %v234_v29 = vld [vmem:[#allocation2 + $0x5e0] sm:$0xff] }
  0xde   :  { %1006 = vmatmul.mubr.f32.gmra.mrb[52].mxu1 %v188_v19  ;;  %v57_v19 = vld [vmem:[#allocation2 + $0x58] sm:$0xff] }
  0xdf   :  { %1011 = vmatprep.mubr.f32.mxu1 %v193_v51  ;;  %v56_v51 = vld [vmem:[#allocation2 + $0x50] sm:$0xff] }
  0xe0   :  { %617 = vmatmul.mubr.f32.gmra.mrb[58].mxu0 %v162_v18  ;;  %v53_v18 = vld [vmem:[#allocation2 + $0x38] sm:$0xff] }
  0xe1   :  { %622 = vmatprep.mubr.f32.mxu0 %v167_v47  ;;  %v52_v47 = vld [vmem:[#allocation2 + $0x30] sm:$0xff] }
  0xe2   :  { %1012 = vmatmul.mubr.f32.gmra.mrb[54].mxu1 %v192_v25  ;;  %v65_v25 = vld [vmem:[#allocation2 + $0x98] sm:$0xff] }
  0xe3   :  { %1017 = vmatprep.mubr.f32.mxu1 %v197_v2  ;;  %v64_v2 = vld [vmem:[#allocation2 + $0x90] sm:$0xff] }
  0xe4   :  { %623 = vmatmul.mubr.f32.gmra.mrb[60].mxu0 %v166_v20  ;;  %v61_v20 = vld [vmem:[#allocation2 + $0x78] sm:$0xff] }
  0xe5   :  { %628 = vmatprep.mubr.f32.mxu0 %v171_v0  ;;  %v60_v0 = vld [vmem:[#allocation2 + $0x70] sm:$0xff] }
  0xe6   :  { %1018 = vmatmul.mubr.f32.gmra.mrb[56].mxu1 %v196_v27  ;;  %v73_v27 = vld [vmem:[#allocation2 + $0xd8] sm:$0xff] }
  0xe7   :  { %1023 = vmatprep.mubr.f32.mxu1 %v201_v12  ;;  %v72_v12 = vld [vmem:[#allocation2 + $0xd0] sm:$0xff] }
  0xe8   :  { %629 = vmatmul.mubr.f32.gmra.mrb[62].mxu0 %v170_v26  ;;  %v69_v26 = vld [vmem:[#allocation2 + $0xb8] sm:$0xff] }
  0xe9   :  { %634 = vmatprep.mubr.f32.mxu0 %v175_v10  ;;  %v68_v10 = vld [vmem:[#allocation2 + $0xb0] sm:$0xff] }
  0xea   :  { %1024 = vmatmul.mubr.f32.gmra.mrb[58].mxu1 %v200_v30  ;;  %v81_v30 = vld [vmem:[#allocation2 + $0x118] sm:$0xff] }
  0xeb   :  { %1029 = vmatprep.mubr.f32.mxu1 %v205_v24  ;;  %v80_v24 = vld [vmem:[#allocation2 + $0x110] sm:$0xff] }
  0xec   :  { %635 = vmatmul.mubr.f32.gmra.mrb[64].mxu0 %v174_v28  ;;  %v77_v28 = vld [vmem:[#allocation2 + $0xf8] sm:$0xff] }
  0xed   :  { %640 = vmatprep.mubr.f32.mxu0 %v179_v21  ;;  %v76_v21 = vld [vmem:[#allocation2 + $0xf0] sm:$0xff] }
  0xee   :  { %1030 = vmatmul.mubr.f32.gmra.mrb[60].mxu1 %v204_v34 }
  0xef   :  { %1035 = vmatprep.mubr.f32.mxu1 %v209_v39 }
  0xf0   :  { %641 = vmatmul.mubr.f32.gmra.mrb[66].mxu0 %v178_v31 }
  0xf1   :  { %646 = vmatprep.mubr.f32.mxu0 %v183_v37 }
  0xf2   :  { %1036 = vmatmul.mubr.f32.gmra.mrb[62].mxu1 %v208_v41 }
  0xf3   :  { %1041 = vmatprep.mubr.f32.mxu1 %v213_v44 }
  0xf4   :  { %647 = vmatmul.mubr.f32.gmra.mrb[68].mxu0 %v182_v33  ;;  %v3121_v33 = vlaneseq }
  0xf5   :  { %652 = vmatprep.mubr.f32.mxu0 %v187_v40 }
  0xf6   :  { %1042 = vmatmul.mubr.f32.gmra.mrb[64].mxu1 %v212_v43  ;;  %v2567_v44 = vshrl.u32 %v3121_v33, 7 }
  0xf7   :  { %1047 = vmatprep.mubr.f32.mxu1 %v217_v48 }
  0xf8   :  { %653 = vmatmul.mubr.f32.gmra.mrb[70].mxu0 %v186_v36  ;;  %v370_v48 = vsub.s32 0, %v2567_v44 }
  0xf9   :  { %658 = vmatprep.mubr.f32.mxu0 %v191_v42  ;;  %v1372_v42 = vld [vmem:[%s3119_s3] sm:$0xff] }
  0xfa   :  { %1048 = vmatmul.mubr.f32.gmra.mrb[66].mxu1 %v216_v56  ;;  %1388 = vxpose.xlu0.b32.start [1/16] (narrow) %v1372_v42, 8  ;;  %v366_v56 = vld [vmem:[%s3118_s2] sm:$0x3] }
  0xfb   :  { %1053 = vmatprep.mubr.f32.mxu1 %v221_v49  ;;  %v374_v49 = vsub.s32 1, %v2567_v44 }
  0xfc   :  { %659 = vmatmul.mubr.f32.gmra.mrb[72].mxu0 %v190_v45 }
  0xfd   :  { %664 = vmatprep.mubr.f32.mxu0 %v195_v46  ;;  %v1373_v46 = vld [vmem:[%s3119_s3 + $0x8] sm:$0xff] }
  0xfe   :  { %1054 = vmatmul.mubr.f32.gmra.mrb[68].mxu1 %v220_v63  ;;  %1389 = vxpose.xlu0.b32.cont [2/16] (narrow) %v1373_v46, 8 }
  0xff   :  { %1059 = vmatprep.mubr.f32.mxu1 %v225_v54  ;;  %v1374_v54 = vld [vmem:[%s3119_s3 + $0x10] sm:$0xff] }
 0x100   :  { %665 = vmatmul.mubr.f32.gmra.mrb[74].mxu0 %v194_v59 }
 0x101   :  { %670 = vmatprep.mubr.f32.mxu0 %v199_v53  ;;  %v2584_v53 = vrot.slane %v366_v56, %v370_v48 }
 0x102   :  { %1060 = vmatmul.mubr.f32.gmra.mrb[70].mxu1 %v224_v57  ;;  %1390 = vxpose.xlu0.b32.cont [3/16] (narrow) %v1374_v54, 8 }
 0x103   :  { %1065 = vmatprep.mubr.f32.mxu1 %v229_v11 }
 0x104   :  { %671 = vmatmul.mubr.f32.gmra.mrb[76].mxu0 %v198_v55  ;;  %v2591_v55 = vrot.slane %v366_v56, %v374_v49 }
 0x105   :  { %676 = vmatprep.mubr.f32.mxu0 %v203_v9 }
 0x106   :  { %1066 = vmatmul.mubr.f32.gmra.mrb[72].mxu1 %v228_v60  ;;  %v1375_v60 = vld [vmem:[%s3119_s3 + $0x18] sm:$0xff] }
 0x107   :  { %1071 = vmatprep.mubr.f32.mxu1 %v233_v23  ;;  %1391 = vxpose.xlu0.b32.cont [4/16] (narrow) %v1375_v60, 8 }
 0x108   :  { %677 = vmatmul.mubr.f32.gmra.mrb[78].mxu0 %v202_v58 }
 0x109   :  { %682 = vmatprep.mubr.f32.mxu0 %v207_v22 }
 0x10a   :  { %1072 = vmatmul.mubr.f32.gmra.mrb[74].mxu1 %v232_v62 }
 0x10b   :  { %1077 = vmatprep.mubr.f32.mxu1 %v237_v38 }
 0x10c   :  { %683 = vmatmul.mubr.f32.gmra.mrb[80].mxu0 %v206_v61 }
 0x10d   :  { %688 = vmatprep.mubr.f32.mxu0 %v211_v35 }
 0x10e   :  { %1078 = vmatmul.mubr.f32.gmra.mrb[76].mxu1 %v236_v5 }
 0x110   :  { %689 = vmatmul.mubr.f32.gmra.mrb[82].mxu0 %v210_v4 }
 0x111   :  { %694 = vmatprep.mubr.f32.mxu0 %v215_v50 }
 0x114   :  { %695 = vmatmul.mubr.f32.gmra.mrb[84].mxu0 %v214_v52  ;;  %v1376_v52 = vld [vmem:[%s3119_s3 + $0x20] sm:$0xff] }
 0x115   :  { %700 = vmatprep.mubr.f32.mxu0 %v219_v6  ;;  %1392 = vxpose.xlu0.b32.cont [5/16] (narrow) %v1376_v52, 8 }
 0x118   :  { %701 = vmatmul.mubr.f32.gmra.mrb[86].mxu0 %v218_v1 }
 0x119   :  { %706 = vmatprep.mubr.f32.mxu0 %v223_v7 }
 0x11c   :  { %707 = vmatmul.mubr.f32.gmra.mrb[88].mxu0 %v222_v3 }
 0x11d   :  { %712 = vmatprep.mubr.f32.mxu0 %v227_v8 }
 0x120   :  { %713 = vmatmul.mubr.f32.gmra.mrb[90].mxu0 %v226_v15 }
 0x121   :  { %718 = vmatprep.mubr.f32.mxu0 %v231_v13 }
 0x124   :  { %719 = vmatmul.mubr.f32.gmra.mrb[92].mxu0 %v230_v17 }
 0x125   :  { %724 = vmatprep.mubr.f32.mxu0 %v235_v14 }
 0x128   :  { %725 = vmatmul.mubr.f32.gmra.mrb[94].mxu0 %v234_v29  ;;  %v1377_v29 = vld [vmem:[%s3119_s3 + $0x28] sm:$0xff] }
 0x129   :  { %795 = vmatprep.mubr.f32.mxu0 %v49_v16  ;;  %1393 = vxpose.xlu0.b32.cont [6/16] (narrow) %v1377_v29, 8 }
 0x12c   :  { %796 = vmatmul.mubr.f32.vlgmr.msra.gmra.mrb[0].mxu0 %v48_v32 }
 0x12d   :  { %801 = vmatprep.mubr.f32.mxu0 %v53_v18 }
 0x130   :  { %802 = vmatmul.mubr.f32.gmra.mrb[2].mxu0 %v52_v47 }
 0x131   :  { %807 = vmatprep.mubr.f32.mxu0 %v57_v19 }
 0x134   :  { %808 = vmatmul.mubr.f32.gmra.mrb[4].mxu0 %v56_v51 }
 0x135   :  { %813 = vmatprep.mubr.f32.mxu0 %v61_v20 }
 0x138   :  { %814 = vmatmul.mubr.f32.gmra.mrb[6].mxu0 %v60_v0 }
 0x139   :  { %819 = vmatprep.mubr.f32.mxu0 %v65_v25 }
 0x13c   :  { %820 = vmatmul.mubr.f32.gmra.mrb[8].mxu0 %v64_v2  ;;  %v1378_v2 = vld [vmem:[%s3119_s3 + $0x30] sm:$0xff] }
 0x13d   :  { %825 = vmatprep.mubr.f32.mxu0 %v69_v26  ;;  %1394 = vxpose.xlu0.b32.cont [7/16] (narrow) %v1378_v2, 8 }
 0x140   :  { %826 = vmatmul.mubr.f32.gmra.mrb[10].mxu0 %v68_v10 }
 0x141   :  { %831 = vmatprep.mubr.f32.mxu0 %v73_v27 }
 0x144   :  { %832 = vmatmul.mubr.f32.gmra.mrb[12].mxu0 %v72_v12 }
 0x145   :  { %837 = vmatprep.mubr.f32.mxu0 %v77_v28 }
 0x148   :  { %838 = vmatmul.mubr.f32.gmra.mrb[14].mxu0 %v76_v21 }
 0x149   :  { %843 = vmatprep.mubr.f32.mxu0 %v81_v30  ;;  %v851_v31 = vpop.f32.mrb[0].mxu1 }
 0x14a   :  { %v853_v37 = vpop.f32.mrb[1].mxu1 }
 0x14c   :  { %844 = vmatmul.mubr.f32.gmra.mrb[16].mxu0 %v80_v24 }
 0x14d   :  { %v857_v34 = vpop.f32.mrb[2].mxu1 }
 0x14e   :  { %v859_v39 = vpop.f32.mrb[3].mxu1 }
 0x151   :  { %v863_v40 = vpop.f32.mrb[4].mxu1 }
 0x152   :  { %v865_v41 = vpop.f32.mrb[5].mxu1 }
 0x155   :  { %v869_v36 = vpop.f32.mrb[6].mxu1 }
 0x156   :  { %v871_v43 = vpop.f32.mrb[7].mxu1 }
 0x159   :  { %v2573_v45 = vpop.f32.mrb[8].mxu1 }
 0x15a   :  { %v2582_v59 = vpop.f32.mrb[9].mxu1 }
 0x15d   :  { %v2586_v63 = vpop.f32.mrb[10].mxu1 }
 0x15e   :  { %v2593_v9 = vpop.f32.mrb[11].mxu1 }
 0x161   :  { %v2596_v22 = vpop.f32.mrb[12].mxu1 }
 0x162   :  { %v2602_v61 = vpop.f32.mrb[13].mxu1 }
 0x163   :  { %v498_v57 = vpop.f32.mrb[18].mxu0 }
 0x164   :  { %v499_v11 = vadd.f32 %v498_v57, %v2584_v53  ;;  %v500_v58 = vpop.f32.mrb[19].mxu0 }
 0x165   :  { %v501_v23 = vadd.f32 %v500_v58, %v2591_v55  ;;  %v2605_v5 = vpop.f32.mrb[14].mxu1 }
 0x166   :  { %v852_v35 = vadd.f32 %v851_v31, %v499_v11  ;;  %v2611_v7 = vpop.f32.mrb[15].mxu1  ;;  %v1380_v11 = vld [vmem:[%s3119_s3 + $0x40] sm:$0xff] }
 0x167   :  { %v854_v62 = vadd.f32 %v853_v37, %v501_v23  ;;  %v504_v38 = vpop.f32.mrb[20].mxu0  ;;  %v1379_v37 = vld [vmem:[%s3119_s3 + $0x38] sm:$0xff] }
 0x168   :  { %v505_v4 = vadd.f32 %v504_v38, %v2584_v53  ;;  %v506_v50 = vpop.f32.mrb[21].mxu0  ;;  %1395 = vxpose.xlu0.b32.cont [8/16] (narrow) %v1379_v37, 8 }
 0x169   :  { %v1141_v6 = vmul.f32 0.5, %v854_v62  ;;  %v507_v1 = vadd.f32 %v506_v50, %v2591_v55  ;;  %v2614_v14 = vpop.f32.mrb[16].mxu1 }
 0x16a   :  { %v858_v3 = vadd.f32 %v857_v34, %v505_v4  ;;  %v2620_v18 = vpop.f32.mrb[17].mxu1 }
 0x16b   :  { %2114 = vtanh.f32 %v1141_v6  ;;  %v860_v8 = vadd.f32 %v859_v39, %v507_v1  ;;  %v510_v15 = vpop.f32.mrb[22].mxu0 }
 0x16c   :  { %v511_v13 = vadd.f32 %v510_v15, %v2584_v53  ;;  %v512_v17 = vpop.f32.mrb[23].mxu0  ;;  %2116 = vtanh.f32 %v852_v35  ;;  %1396 = vxpose.xlu0.b32.cont [9/16] (narrow) %v1380_v11, 8 }
 0x16d   :  { %v1142_v16 = vmul.f32 0.5, %v860_v8  ;;  %v513_v32 = vadd.f32 %v512_v17, %v2591_v55  ;;  %v2623_v25 = vpop.f32.mrb[18].mxu1  ;;  %v1381_v8 = vld [vmem:[%s3119_s3 + $0x48] sm:$0xff] }
 0x16e   :  { %v864_v47 = vadd.f32 %v863_v40, %v511_v13  ;;  %v2629_v27 = vpop.f32.mrb[19].mxu1 }
 0x16f   :  { %2118 = vtanh.f32 %v1142_v16  ;;  %v866_v19 = vadd.f32 %v865_v41, %v513_v32  ;;  %v516_v51 = vpop.f32.mrb[24].mxu0 }
 0x170   :  { %v517_v20 = vadd.f32 %v516_v51, %v2584_v53  ;;  %v518_v0 = vpop.f32.mrb[25].mxu0  ;;  %2120 = vtanh.f32 %v858_v3  ;;  %1397 = vxpose.xlu0.b32.cont [10/16] (narrow) %v1381_v8, 8 }
 0x171   :  { %v1143_v26 = vmul.f32 0.5, %v866_v19  ;;  %v519_v10 = vadd.f32 %v518_v0, %v2591_v55  ;;  %v2632_v31 = vpop.f32.mrb[20].mxu1 }
 0x172   :  { %v870_v12 = vadd.f32 %v869_v36, %v517_v20  ;;  %v2638_v41 = vpop.f32.mrb[21].mxu1 }
 0x173   :  { %2122 = vtanh.f32 %v1143_v26  ;;  %v872_v28 = vadd.f32 %v871_v43, %v519_v10  ;;  %v522_v21 = vpop.f32.mrb[26].mxu0  ;;  %v1382_v26 = vld [vmem:[%s3119_s3 + $0x50] sm:$0xff] }
 0x174   :  { %v523_v30 = vadd.f32 %v522_v21, %v2584_v53  ;;  %v524_v24 = vpop.f32.mrb[27].mxu0  ;;  %2124 = vtanh.f32 %v864_v47  ;;  %1398 = vxpose.xlu0.b32.cont [11/16] (narrow) %v1382_v26, 8 }
 0x175   :  { %v2115_v34 = vpop.eup %2114  ;;  %v1144_v39 = vmul.f32 0.5, %v872_v28  ;;  %v525_v40 = vadd.f32 %v524_v24, %v2591_v55  ;;  %v2643_v57 = vpop.f32.mrb[22].mxu1 }
 0x176   :  { %v1237_v36 = vadd.f32 1.0, %v2115_v34  ;;  %v876_v42 = vadd.f32 %v2573_v45, %v523_v30  ;;  %v2117_v46 = vpop.eup %2116  ;;  %v2649_v45 = vpop.f32.mrb[23].mxu1 }
 0x177   :  { %2126 = vtanh.f32 %v1144_v39  ;;  %v878_v43 = vadd.f32 %v2582_v59, %v525_v40  ;;  %v528_v48 = vpop.f32.mrb[28].mxu0 }
 0x178   :  { %v1285_v56 = vmul.f32 0.5, %v1237_v36  ;;  %v529_v49 = vadd.f32 %v528_v48, %v2584_v53  ;;  %v530_v54 = vpop.f32.mrb[29].mxu0  ;;  %2128 = vtanh.f32 %v870_v12 }
 0x179   :  { %v2119_v58 = vpop.eup %2118  ;;  %v1145_v60 = vmul.f32 0.5, %v878_v43  ;;  %v531_v23 = vadd.f32 %v530_v54, %v2591_v55  ;;  %v2656_v3 = vpop.f32.mrb[24].mxu1  ;;  %v1383_v43 = vld [vmem:[%s3119_s3 + $0x58] sm:$0xff] }
 0x17a   :  { %v2651_v59 = vmul.f32 %v2117_v46, %v1285_v56  ;;  %v1238_v35 = vadd.f32 1.0, %v2119_v58  ;;  %v882_v62 = vadd.f32 %v2586_v63, %v529_v49  ;;  %v2121_v50 = vpop.eup %2120  ;;  %v2662_v63 = vpop.f32.mrb[25].mxu1  ;;  %1399 = vxpose.xlu0.b32.cont [12/16] (narrow) %v1383_v43, 8 }
 0x17b   :  { %2130 = vtanh.f32 %v1145_v60  ;;  %v884_v38 = vadd.f32 %v2593_v9, %v531_v23  ;;  %v534_v4 = vpop.f32.mrb[30].mxu0 }
 0x17c   :  { %v1286_v52 = vmul.f32 0.5, %v1238_v35  ;;  %v535_v6 = vadd.f32 %v534_v4, %v2584_v53  ;;  %v536_v1 = vpop.f32.mrb[31].mxu0  ;;  %2132 = vtanh.f32 %v876_v42 }
 0x17d   :  { %v2123_v15 = vpop.eup %2122  ;;  %v1146_v13 = vmul.f32 0.5, %v884_v38  ;;  %v537_v17 = vadd.f32 %v536_v1, %v2591_v55  ;;  %v2669_v2 = vpop.f32.mrb[26].mxu1 }
 0x17e   :  { %v2664_v9 = vmul.f32 %v2121_v50, %v1286_v52  ;;  %v1239_v29 = vadd.f32 1.0, %v2123_v15  ;;  %v888_v16 = vadd.f32 %v2596_v22, %v535_v6  ;;  %v2125_v19 = vpop.eup %2124  ;;  %v2675_v22 = vpop.f32.mrb[27].mxu1  ;;  %v1384_v50 = vld [vmem:[%s3119_s3 + $0x60] sm:$0xff] }
 0x17f   :  { %2134 = vtanh.f32 %v1146_v13  ;;  %v890_v32 = vadd.f32 %v2602_v61, %v537_v17  ;;  %v540_v47 = vpop.f32.mrb[32].mxu0  ;;  %1400 = vxpose.xlu0.b32.cont [13/16] (narrow) %v1384_v50, 8  ;;  %v1387_v50 = vld [vmem:[%s3119_s3 + $0x78] sm:$0xff] }
 0x180   :  { %v1287_v51 = vmul.f32 0.5, %v1239_v29  ;;  %v541_v20 = vadd.f32 %v540_v47, %v2584_v53  ;;  %v542_v0 = vpop.f32.mrb[33].mxu0  ;;  %2136 = vtanh.f32 %v882_v62 }
 0x181   :  { %v2127_v10 = vpop.eup %2126  ;;  %v1147_v12 = vmul.f32 0.5, %v890_v32  ;;  %v543_v28 = vadd.f32 %v542_v0, %v2591_v55  ;;  %v2682_v42 = vpop.f32.mrb[28].mxu1 }
 0x182   :  { %v2677_v61 = vmul.f32 %v2125_v19, %v1287_v51  ;;  %v1240_v21 = vadd.f32 1.0, %v2127_v10  ;;  %v894_v30 = vadd.f32 %v2605_v5, %v541_v20  ;;  %v2129_v34 = vpop.eup %2128  ;;  %v1385_v51 = vld [vmem:[%s3119_s3 + $0x68] sm:$0xff] }
 0x183   :  { %2138 = vtanh.f32 %v1147_v12  ;;  %v896_v24 = vadd.f32 %v2611_v7, %v543_v28  ;;  %v546_v37 = vpop.f32.mrb[34].mxu0  ;;  %v2690_v7 = vpop.f32.mrb[29].mxu1  ;;  %1401 = vxpose.xlu0.b32.cont [14/16] (narrow) %v1385_v51, 8 }
 0x184   :  { %v1288_v39 = vmul.f32 0.5, %v1240_v21  ;;  %v547_v40 = vadd.f32 %v546_v37, %v2584_v53  ;;  %v548_v36 = vpop.f32.mrb[35].mxu0  ;;  %2140 = vtanh.f32 %v888_v16 }
 0x185   :  { %v2131_v46 = vpop.eup %2130  ;;  %v1148_v5 = vmul.f32 0.5, %v896_v24  ;;  %v549_v56 = vadd.f32 %v548_v36, %v2591_v55  ;;  %v2697_v4 = vpop.f32.mrb[30].mxu1  ;;  %v1386_v36 = vld [vmem:[%s3119_s3 + $0x70] sm:$0xff]  ;;  %s2388_s3 = smov [#allocation7]  }
 0x186   :  { %v2692_v49 = vmul.f32 %v2129_v34, %v1288_v39  ;;  %v1241_v54 = vadd.f32 1.0, %v2131_v46  ;;  %v900_v11 = vadd.f32 %v2614_v14, %v547_v40  ;;  %v2133_v23 = vpop.eup %2132  ;;  %v2703_v14 = vpop.f32.mrb[31].mxu1  ;;  %s1599_s21 = sshll.u32 %s2388_s3, 4  ;;  %s1600_s21 = int_to_ptr.vmem [resolvable:$true] %s1599_s21 }
 0x187   :  { %2142 = vtanh.f32 %v1148_v5  ;;  %v902_v58 = vadd.f32 %v2620_v18, %v549_v56  ;;  %v552_v60 = vpop.f32.mrb[36].mxu0  ;;  %1402 = vxpose.xlu0.b32.cont [15/16] (narrow) %v1386_v36, 8  ;;  %s2350_s22 = scalar_lea.vmem %s1600_s21, 48  ;;  %s2354_s23 = scalar_lea.vmem %s1600_s21, 64 }
 0x188   :  { %v1289_v35 = vmul.f32 0.5, %v1241_v54  ;;  %v553_v62 = vadd.f32 %v552_v60, %v2584_v53  ;;  %v554_v38 = vpop.f32.mrb[37].mxu0  ;;  %2144 = vtanh.f32 %v894_v30  ;;  %p2351_p2 = scmp.ne.s32.totalorder %s1600_s21, %s2350_s22  ;;  %p2355_p3 = scmp.lt.s32.totalorder %s1600_s21, %s1600_s21 }
 0x189   :  { %v2135_v52 = vpop.eup %2134  ;;  %v1149_v6 = vmul.f32 0.5, %v902_v58  ;;  %v555_v1 = vadd.f32 %v554_v38, %v2591_v55  ;;  %v2710_v19 = vpop.f32.mrb[32].mxu1  ;;  %p2356_p4 = scmp.lt.s32.totalorder %s2354_s23, %s2350_s22 }
 0x18a   :  { %v2705_v18 = vmul.f32 %v2133_v23, %v1289_v35  ;;  %v1242_v8 = vadd.f32 1.0, %v2135_v52  ;;  %v906_v15 = vadd.f32 %v2623_v25, %v553_v62  ;;  %v2137_v29 = vpop.eup %2136 }
 0x18b   :  { %2146 = vtanh.f32 %v1149_v6  ;;  %v908_v13 = vadd.f32 %v2629_v27, %v555_v1  ;;  %v558_v17 = vpop.f32.mrb[38].mxu0  ;;  %v2718_v27 = vpop.f32.mrb[33].mxu1  ;;  %1403 = vxpose.xlu0.b32.end [16/16] (narrow) %v1387_v50, 8  ;;  %p2357_p5 = por %p2356_p4, %p2355_p3 }
 0x18c   :  { %v1290_v16 = vmul.f32 0.5, %v1242_v8  ;;  %v559_v32 = vadd.f32 %v558_v17, %v2584_v53  ;;  %v560_v47 = vpop.f32.mrb[39].mxu0  ;;  %2148 = vtanh.f32 %v900_v11 }
 0x18d   :  { %v2139_v0 = vpop.eup %2138  ;;  %v1150_v25 = vmul.f32 0.5, %v908_v13  ;;  %v561_v26 = vadd.f32 %v560_v47, %v2591_v55  ;;  %v2725_v40 = vpop.f32.mrb[34].mxu1  ;;  %p2358_p6 = pnand %p2357_p5, %p2351_p2 }
 0x18e   :  { %v2720_v10 = vmul.f32 %v2137_v29, %v1290_v16  ;;  %v1243_v12 = vadd.f32 1.0, %v2139_v0  ;;  %v912_v28 = vadd.f32 %v2632_v31, %v559_v32  ;;  %v2141_v24 = vpop.eup %2140  ;;  %v2731_v31 = vpop.f32.mrb[35].mxu1 }
 0x18f   :  { %2150 = vtanh.f32 %v1150_v25  ;;  %v914_v21 = vadd.f32 %v2638_v41, %v561_v26  ;;  %v564_v30 = vpop.f32.mrb[40].mxu0 }
 0x190   :  { %v1291_v37 = vmul.f32 0.5, %v1243_v12  ;;  %v565_v34 = vadd.f32 %v564_v30, %v2584_v53  ;;  %v566_v39 = vpop.f32.mrb[41].mxu0  ;;  %2152 = vtanh.f32 %v906_v15 }
 0x191   :  { %v2143_v43 = vpop.eup %2142  ;;  %v1151_v46 = vmul.f32 0.5, %v914_v21  ;;  %v567_v5 = vadd.f32 %v566_v39, %v2591_v55  ;;  %v2738_v38 = vpop.f32.mrb[36].mxu1 }
 0x192   :  { %v2733_v41 = vmul.f32 %v2141_v24, %v1291_v37  ;;  %v1244_v56 = vadd.f32 1.0, %v2143_v43  ;;  %v918_v54 = vadd.f32 %v2643_v57, %v565_v34  ;;  %v2145_v60 = vpop.eup %2144 }
 0x193   :  { %2154 = vtanh.f32 %v1151_v46  ;;  %v920_v11 = vadd.f32 %v2649_v45, %v567_v5  ;;  %v570_v58 = vpop.f32.mrb[42].mxu0  ;;  %v2746_v45 = vpop.f32.mrb[37].mxu1 }
 0x194   :  { %v1292_v23 = vmul.f32 0.5, %v1244_v56  ;;  %v571_v35 = vadd.f32 %v570_v58, %v2584_v53  ;;  %v572_v62 = vpop.f32.mrb[43].mxu0  ;;  %2156 = vtanh.f32 %v912_v28 }
 0x195   :  { %v2147_v6 = vpop.eup %2146  ;;  %v1152_v57 = vmul.f32 0.5, %v920_v11  ;;  %v573_v1 = vadd.f32 %v572_v62, %v2591_v55  ;;  %v2751_v0 = vpop.f32.mrb[38].mxu1 }
 0x196   :  { %v1245_v8 = vadd.f32 1.0, %v2147_v6  ;;  %v924_v15 = vadd.f32 %v2656_v3, %v571_v35  ;;  %v1340_v13 = vmul.f32 %v2145_v60, %v1292_v23  ;;  %v2149_v16 = vpop.eup %2148  ;;  %v2754_v21 = vpop.f32.mrb[39].mxu1 }
 0x197   :  { %2158 = vtanh.f32 %v1152_v57  ;;  %v926_v17 = vadd.f32 %v2662_v63, %v573_v1  ;;  %v576_v29 = vpop.f32.mrb[44].mxu0 }
 0x198   :  { %v1293_v32 = vmul.f32 0.5, %v1245_v8  ;;  %v577_v47 = vadd.f32 %v576_v29, %v2584_v53  ;;  %v578_v51 = vpop.f32.mrb[45].mxu0  ;;  %2160 = vtanh.f32 %v918_v54 }
 0x199   :  { %v2151_v25 = vpop.eup %2150  ;;  %v1153_v26 = vmul.f32 0.5, %v926_v17  ;;  %v579_v12 = vadd.f32 %v578_v51, %v2591_v55  ;;  %v2759_v46 = vpop.f32.mrb[40].mxu1 }
 0x19a   :  { %v1246_v28 = vadd.f32 1.0, %v2151_v25  ;;  %v930_v3 = vadd.f32 %v2669_v2, %v577_v47  ;;  %v1341_v30 = vmul.f32 %v2149_v16, %v1293_v32  ;;  %v2153_v37 = vpop.eup %2152  ;;  %v2762_v54 = vpop.f32.mrb[41].mxu1 }
 0x19b   :  { %2162 = vtanh.f32 %v1153_v26  ;;  %v932_v63 = vadd.f32 %v2675_v22, %v579_v12  ;;  %v582_v24 = vpop.f32.mrb[46].mxu0 }
 0x19c   :  { %v1294_v34 = vmul.f32 0.5, %v1246_v28  ;;  %v583_v39 = vadd.f32 %v582_v24, %v2584_v53  ;;  %v584_v36 = vpop.f32.mrb[47].mxu0  ;;  %v1823_v43 = vpack.c.bf16 %v1341_v30, %v1340_v13  ;;  %2164 = vtanh.f32 %v924_v15 }
 0x19d   :  { %v2155_v5 = vpop.eup %2154  ;;  %v1154_v56 = vmul.f32 0.5, %v932_v63  ;;  %v585_v11 = vadd.f32 %v584_v36, %v2591_v55  ;;  %v2769_v57 = vpop.f32.mrb[42].mxu1 }
 0x19e   :  { %v1247_v2 = vadd.f32 1.0, %v2155_v5  ;;  %v936_v58 = vadd.f32 %v2682_v42, %v583_v39  ;;  %1824 = vmatprep.subr.bf16.mxu1 %v1823_v43  ;;  %v2765_v22 = vmul.f32 %v2153_v37, %v1294_v34  ;;  %v2157_v35 = vpop.eup %2156  ;;  %v2772_v13 = vpop.f32.mrb[43].mxu1 }
 0x19f   :  { %2166 = vtanh.f32 %v1154_v56  ;;  %v938_v60 = vadd.f32 %v2690_v7, %v585_v11  ;;  %v588_v23 = vpop.f32.mrb[48].mxu0 }
 0x1a0   :  { %v1295_v62 = vmul.f32 0.5, %v1247_v2  ;;  %v589_v50 = vadd.f32 %v588_v23, %v2584_v53  ;;  %v590_v6 = vpop.f32.mrb[49].mxu0  ;;  %2168 = vtanh.f32 %v930_v3 }
 0x1a1   :  { %v2159_v1 = vpop.eup %2158  ;;  %v1155_v8 = vmul.f32 0.5, %v938_v60  ;;  %v591_v15 = vadd.f32 %v590_v6, %v2591_v55  ;;  %v2779_v26 = vpop.f32.mrb[44].mxu1 }
 0x1a2   :  { %v1248_v42 = vadd.f32 1.0, %v2159_v1  ;;  %v942_v17 = vadd.f32 %v2697_v4, %v589_v50  ;;  %v2775_v29 = vmul.f32 %v2157_v35, %v1295_v62  ;;  %v2161_v32 = vpop.eup %2160  ;;  %v2784_v30 = vpop.f32.mrb[45].mxu1 }
 0x1a3   :  { %2170 = vtanh.f32 %v1155_v8  ;;  %v944_v7 = vadd.f32 %v2703_v14, %v591_v15  ;;  %v594_v16 = vpop.f32.mrb[50].mxu0 }
 0x1a4   :  { %v1296_v47 = vmul.f32 0.5, %v1248_v42  ;;  %v595_v51 = vadd.f32 %v594_v16, %v2584_v53  ;;  %v596_v25 = vpop.f32.mrb[51].mxu0  ;;  %2172 = vtanh.f32 %v936_v58 }
 0x1a5   :  { %v2163_v28 = vpop.eup %2162  ;;  %v1156_v3 = vmul.f32 0.5, %v944_v7  ;;  %v597_v4 = vadd.f32 %v596_v25, %v2591_v55  ;;  %v2791_v56 = vpop.f32.mrb[46].mxu1 }
 0x1a6   :  { %v1249_v63 = vadd.f32 1.0, %v2163_v28  ;;  %v948_v14 = vadd.f32 %v2710_v19, %v595_v51  ;;  %v2787_v24 = vmul.f32 %v2161_v32, %v1296_v47  ;;  %v2165_v39 = vpop.eup %2164  ;;  %v2794_v58 = vpop.f32.mrb[47].mxu1 }
 0x1a7   :  { %2174 = vtanh.f32 %v1156_v3  ;;  %v950_v37 = vadd.f32 %v2718_v27, %v597_v4  ;;  %v600_v34 = vpop.f32.mrb[52].mxu0 }
 0x1a8   :  { %v1297_v36 = vmul.f32 0.5, %v1249_v63  ;;  %v601_v43 = vadd.f32 %v600_v34, %v2584_v53  ;;  %v602_v5 = vpop.f32.mrb[53].mxu0  ;;  %2176 = vtanh.f32 %v942_v17 }
 0x1a9   :  { %v2167_v11 = vpop.eup %2166  ;;  %v1157_v2 = vmul.f32 0.5, %v950_v37  ;;  %v603_v60 = vadd.f32 %v602_v5, %v2591_v55  ;;  %v2801_v15 = vpop.f32.mrb[48].mxu1 }
 0x1aa   :  { %v1250_v19 = vadd.f32 1.0, %v2167_v11  ;;  %v954_v23 = vadd.f32 %v2725_v40, %v601_v43  ;;  %v2797_v35 = vmul.f32 %v2165_v39, %v1297_v36  ;;  %v2169_v50 = vpop.eup %2168  ;;  %v2806_v16 = vpop.f32.mrb[49].mxu1 }
 0x1ab   :  { %2178 = vtanh.f32 %v1157_v2  ;;  %v956_v27 = vadd.f32 %v2731_v31, %v603_v60  ;;  %v606_v62 = vpop.f32.mrb[54].mxu0 }
 0x1ac   :  { %v1298_v6 = vmul.f32 0.5, %v1250_v19  ;;  %v607_v1 = vadd.f32 %v606_v62, %v2584_v53  ;;  %v608_v8 = vpop.f32.mrb[55].mxu0  ;;  %2180 = vtanh.f32 %v948_v14 }
 0x1ad   :  { %v2171_v7 = vpop.eup %2170  ;;  %v1158_v17 = vmul.f32 0.5, %v956_v27  ;;  %v609_v40 = vadd.f32 %v608_v8, %v2591_v55  ;;  %v2813_v37 = vpop.f32.mrb[50].mxu1 }
 0x1ae   :  { %v1251_v32 = vadd.f32 1.0, %v2171_v7  ;;  %v960_v31 = vadd.f32 %v2738_v38, %v607_v1  ;;  %v2809_v47 = vmul.f32 %v2169_v50, %v1298_v6  ;;  %v2173_v28 = vpop.eup %2172  ;;  %v2816_v14 = vpop.f32.mrb[51].mxu1 }
 0x1af   :  { %2182 = vtanh.f32 %v1158_v17  ;;  %v962_v51 = vadd.f32 %v2746_v45, %v609_v40  ;;  %v612_v25 = vpop.f32.mrb[56].mxu0 }
 0x1b0   :  { %v1299_v3 = vmul.f32 0.5, %v1251_v32  ;;  %v613_v4 = vadd.f32 %v612_v25, %v2584_v53  ;;  %v614_v63 = vpop.f32.mrb[57].mxu0  ;;  %2184 = vtanh.f32 %v954_v23 }
 0x1b1   :  { %v2175_v34 = vpop.eup %2174  ;;  %v1159_v39 = vmul.f32 0.5, %v962_v51  ;;  %v615_v36 = vadd.f32 %v614_v63, %v2591_v55  ;;  %v2823_v62 = vpop.f32.mrb[52].mxu1 }
 0x1b2   :  { %v1252_v38 = vadd.f32 1.0, %v2175_v34  ;;  %v966_v43 = vadd.f32 %v2751_v0, %v613_v4  ;;  %v2819_v5 = vmul.f32 %v2173_v28, %v1299_v3  ;;  %v2177_v2 = vpop.eup %2176  ;;  %v2828_v1 = vpop.f32.mrb[53].mxu1 }
 0x1b3   :  { %2186 = vtanh.f32 %v1159_v39  ;;  %v968_v45 = vadd.f32 %v2754_v21, %v615_v36  ;;  %v618_v11 = vpop.f32.mrb[58].mxu0 }
 0x1b4   :  { %v1300_v60 = vmul.f32 0.5, %v1252_v38  ;;  %v619_v19 = vadd.f32 %v618_v11, %v2584_v53  ;;  %v620_v27 = vpop.f32.mrb[59].mxu0  ;;  %2188 = vtanh.f32 %v960_v31 }
 0x1b5   :  { %v2179_v6 = vpop.eup %2178  ;;  %v1160_v23 = vmul.f32 0.5, %v968_v45  ;;  %v621_v0 = vadd.f32 %v620_v27, %v2591_v55  ;;  %v2835_v3 = vpop.f32.mrb[54].mxu1 }
 0x1b6   :  { %v1253_v8 = vadd.f32 1.0, %v2179_v6  ;;  %v972_v21 = vadd.f32 %v2759_v46, %v619_v19  ;;  %v2831_v7 = vmul.f32 %v2177_v2, %v1300_v60  ;;  %v2181_v32 = vpop.eup %2180  ;;  %v2838_v31 = vpop.f32.mrb[55].mxu1 }
 0x1b7   :  { %2190 = vtanh.f32 %v1160_v23  ;;  %v974_v17 = vadd.f32 %v2762_v54, %v621_v0  ;;  %v624_v40 = vpop.f32.mrb[60].mxu0 }
 0x1b8   :  { %v1301_v51 = vmul.f32 0.5, %v1253_v8  ;;  %v625_v25 = vadd.f32 %v624_v40, %v2584_v53  ;;  %v626_v28 = vpop.f32.mrb[61].mxu0  ;;  %2192 = vtanh.f32 %v966_v43 }
 0x1b9   :  { %v2183_v4 = vpop.eup %2182  ;;  %v1161_v63 = vmul.f32 0.5, %v974_v17  ;;  %v627_v34 = vadd.f32 %v626_v28, %v2591_v55  ;;  %v2845_v19 = vpop.f32.mrb[56].mxu1 }
 0x1ba   :  { %v1254_v46 = vadd.f32 1.0, %v2183_v4  ;;  %v978_v39 = vadd.f32 %v2769_v57, %v625_v25  ;;  %v2841_v36 = vmul.f32 %v2181_v32, %v1301_v51  ;;  %v2185_v45 = vpop.eup %2184  ;;  %v2850_v23 = vpop.f32.mrb[57].mxu1 }
 0x1bb   :  { %2194 = vtanh.f32 %v1161_v63  ;;  %v980_v54 = vadd.f32 %v2772_v13, %v627_v34  ;;  %v630_v38 = vpop.f32.mrb[62].mxu0 }
 0x1bc   :  { %v1302_v11 = vmul.f32 0.5, %v1254_v46  ;;  %v631_v2 = vadd.f32 %v630_v38, %v2584_v53  ;;  %v632_v60 = vpop.f32.mrb[63].mxu0  ;;  %2196 = vtanh.f32 %v972_v21 }
 0x1bd   :  { %v2187_v6 = vpop.eup %2186  ;;  %v1162_v43 = vmul.f32 0.5, %v980_v54  ;;  %v633_v57 = vadd.f32 %v632_v60, %v2591_v55  ;;  %v2857_v4 = vpop.f32.mrb[58].mxu1 }
 0x1be   :  { %v1255_v0 = vadd.f32 1.0, %v2187_v6  ;;  %v984_v13 = vadd.f32 %v2779_v26, %v631_v2  ;;  %v2853_v8 = vmul.f32 %v2185_v45, %v1302_v11  ;;  %v2189_v32 = vpop.eup %2188  ;;  %v2860_v21 = vpop.f32.mrb[59].mxu1 }
 0x1bf   :  { %2198 = vtanh.f32 %v1162_v43  ;;  %v986_v17 = vadd.f32 %v2784_v30, %v633_v57  ;;  %v636_v40 = vpop.f32.mrb[64].mxu0 }
 0x1c0   :  { %v1303_v51 = vmul.f32 0.5, %v1255_v0  ;;  %v637_v25 = vadd.f32 %v636_v40, %v2584_v53  ;;  %v638_v28 = vpop.f32.mrb[65].mxu0  ;;  %2200 = vtanh.f32 %v978_v39 }
 0x1c1   :  { %v2191_v63 = vpop.eup %2190  ;;  %v1163_v34 = vmul.f32 0.5, %v986_v17  ;;  %v639_v46 = vadd.f32 %v638_v28, %v2591_v55  ;;  %v2867_v43 = vpop.f32.mrb[60].mxu1 }
 0x1c2   :  { %v1256_v26 = vadd.f32 1.0, %v2191_v63  ;;  %v990_v54 = vadd.f32 %v2791_v56, %v637_v25  ;;  %v2863_v38 = vmul.f32 %v2189_v32, %v1303_v51  ;;  %v2193_v11 = vpop.eup %2192  ;;  %v2872_v17 = vpop.f32.mrb[61].mxu1 }
 0x1c3   :  { %2202 = vtanh.f32 %v1163_v34  ;;  %v992_v30 = vadd.f32 %v2794_v58, %v639_v46  ;;  %v642_v45 = vpop.f32.mrb[66].mxu0 }
 0x1c4   :  { %v1304_v2 = vmul.f32 0.5, %v1256_v26  ;;  %v643_v60 = vadd.f32 %v642_v45, %v2584_v53  ;;  %v644_v6 = vpop.f32.mrb[67].mxu0  ;;  %2204 = vtanh.f32 %v984_v13 }
 0x1c5   :  { %v2195_v0 = vpop.eup %2194  ;;  %v1164_v39 = vmul.f32 0.5, %v992_v30  ;;  %v645_v56 = vadd.f32 %v644_v6, %v2591_v55  ;;  %v2879_v26 = vpop.f32.mrb[62].mxu1 }
 0x1c6   :  { %v1257_v40 = vadd.f32 1.0, %v2195_v0  ;;  %v996_v58 = vadd.f32 %v2801_v15, %v643_v60  ;;  %v2875_v32 = vmul.f32 %v2193_v11, %v1304_v2  ;;  %v2197_v28 = vpop.eup %2196  ;;  %v2882_v13 = vpop.f32.mrb[63].mxu1 }
 0x1c7   :  { %2206 = vtanh.f32 %v1164_v39  ;;  %v998_v51 = vadd.f32 %v2806_v16, %v645_v56  ;;  %v648_v25 = vpop.f32.mrb[68].mxu0 }
 0x1c8   :  { %v1305_v63 = vmul.f32 0.5, %v1257_v40  ;;  %v649_v34 = vadd.f32 %v648_v25, %v2584_v53  ;;  %v650_v46 = vpop.f32.mrb[69].mxu0  ;;  %2208 = vtanh.f32 %v990_v54 }
 0x1c9   :  { %v2199_v30 = vpop.eup %2198  ;;  %v1165_v45 = vmul.f32 0.5, %v998_v51  ;;  %v651_v6 = vadd.f32 %v650_v46, %v2591_v55  ;;  %v2889_v51 = vpop.f32.mrb[64].mxu1 }
 0x1ca   :  { %v1258_v15 = vadd.f32 1.0, %v2199_v30  ;;  %v1002_v11 = vadd.f32 %v2813_v37, %v649_v34  ;;  %v2885_v2 = vmul.f32 %v2197_v28, %v1305_v63  ;;  %v2201_v0 = vpop.eup %2200  ;;  %v2894_v28 = vpop.f32.mrb[65].mxu1 }
 0x1cb   :  { %2210 = vtanh.f32 %v1165_v45  ;;  %v1004_v16 = vadd.f32 %v2816_v14, %v651_v6  ;;  %v654_v60 = vpop.f32.mrb[70].mxu0 }
 0x1cc   :  { %v1306_v39 = vmul.f32 0.5, %v1258_v15  ;;  %v655_v56 = vadd.f32 %v654_v60, %v2584_v53  ;;  %v656_v40 = vpop.f32.mrb[71].mxu0  ;;  %2212 = vtanh.f32 %v996_v58 }
 0x1cd   :  { %v2203_v46 = vpop.eup %2202  ;;  %v1166_v54 = vmul.f32 0.5, %v1004_v16  ;;  %v657_v37 = vadd.f32 %v656_v40, %v2591_v55  ;;  %v2901_v16 = vpop.f32.mrb[66].mxu1 }
 0x1ce   :  { %v1259_v63 = vadd.f32 1.0, %v2203_v46  ;;  %v1008_v14 = vadd.f32 %v2823_v62, %v655_v56  ;;  %v2897_v34 = vmul.f32 %v2201_v0, %v1306_v39  ;;  %v2205_v6 = vpop.eup %2204  ;;  %v2904_v58 = vpop.f32.mrb[67].mxu1 }
 0x1cf   :  { %2214 = vtanh.f32 %v1166_v54  ;;  %v1010_v30 = vadd.f32 %v2828_v1, %v657_v37  ;;  %v660_v45 = vpop.f32.mrb[72].mxu0 }
 0x1d0   :  { %v1307_v15 = vmul.f32 0.5, %v1259_v63  ;;  %v661_v60 = vadd.f32 %v660_v45, %v2584_v53  ;;  %v662_v33 = vpop.f32.mrb[73].mxu0  ;;  %2216 = vtanh.f32 %v1002_v11 }
 0x1d1   :  { %v2207_v40 = vpop.eup %2206  ;;  %v1167_v52 = vmul.f32 0.5, %v1010_v30  ;;  %v663_v46 = vadd.f32 %v662_v33, %v2591_v55  ;;  %v2911_v30 = vpop.f32.mrb[68].mxu1 }
 0x1d2   :  { %v1260_v62 = vadd.f32 1.0, %v2207_v40  ;;  %v1014_v0 = vadd.f32 %v2835_v3, %v661_v60  ;;  %v2907_v39 = vmul.f32 %v2205_v6, %v1307_v15  ;;  %v2209_v54 = vpop.eup %2208  ;;  %v2916_v6 = vpop.f32.mrb[69].mxu1 }
 0x1d3   :  { %2218 = vtanh.f32 %v1167_v52  ;;  %v1016_v1 = vadd.f32 %v2838_v31, %v663_v46  ;;  %v666_v56 = vpop.f32.mrb[74].mxu0 }
 0x1d4   :  { %v1308_v37 = vmul.f32 0.5, %v1260_v62  ;;  %v667_v63 = vadd.f32 %v666_v56, %v2584_v53  ;;  %v668_v45 = vpop.f32.mrb[75].mxu0  ;;  %2220 = vtanh.f32 %v1008_v14  ;;  %v2928_v14 = vpop.trf.xlu0 }
 0x1d5   :  { %v2211_v40 = vpop.eup %2210  ;;  %v1168_v11 = vmul.f32 0.5, %v1016_v1  ;;  %v669_v3 = vadd.f32 %v668_v45, %v2591_v55  ;;  %v2923_v1 = vpop.f32.mrb[70].mxu1  ;;  %1641 = vmatprep.mubr.f32.mxu1 %v2928_v14 }
 0x1d6   :  { %v2918_v52 = vmul.f32 %v2209_v54, %v1308_v37  ;;  %v1261_v31 = vadd.f32 1.0, %v2211_v40  ;;  %v1020_v15 = vadd.f32 %v2845_v19, %v667_v63  ;;  %v2213_v62 = vpop.eup %2212  ;;  %v2926_v37 = vpop.f32.mrb[71].mxu1 }
 0x1d7   :  { %2222 = vtanh.f32 %v1168_v11  ;;  %v1022_v60 = vadd.f32 %v2850_v23, %v669_v3  ;;  %v672_v46 = vpop.f32.mrb[76].mxu0 }
 0x1d8   :  { %v1309_v56 = vmul.f32 0.5, %v1261_v31  ;;  %v673_v33 = vadd.f32 %v672_v46, %v2584_v53  ;;  %v674_v20 = vpop.f32.mrb[77].mxu0  ;;  %2224 = vtanh.f32 %v1014_v0 }
 0x1d9   :  { %v2215_v45 = vpop.eup %2214  ;;  %v1169_v25 = vmul.f32 0.5, %v1022_v60  ;;  %v675_v54 = vadd.f32 %v674_v20, %v2591_v55  ;;  %v2936_v46 = vpop.f32.mrb[72].mxu1 }
 0x1da   :  { %v2930_v19 = vmul.f32 %v2213_v62, %v1309_v56  ;;  %v1262_v63 = vadd.f32 1.0, %v2215_v45  ;;  %v1026_v23 = vadd.f32 %v2857_v4, %v673_v33  ;;  %v2217_v3 = vpop.eup %2216  ;;  %v2941_v33 = vpop.f32.mrb[73].mxu1 }
 0x1db   :  { %2226 = vtanh.f32 %v1169_v25  ;;  %v1028_v40 = vadd.f32 %v2860_v21, %v675_v54  ;;  %v678_v11 = vpop.f32.mrb[78].mxu0 }
 0x1dc   :  { %v1310_v31 = vmul.f32 0.5, %v1262_v63  ;;  %v679_v20 = vadd.f32 %v678_v11, %v2584_v53  ;;  %v680_v60 = vpop.f32.mrb[79].mxu0  ;;  %2228 = vtanh.f32 %v1020_v15 }
 0x1dd   :  { %v2219_v56 = vpop.eup %2218  ;;  %v1170_v0 = vmul.f32 0.5, %v1028_v40  ;;  %v681_v4 = vadd.f32 %v680_v60, %v2591_v55  ;;  %v2948_v40 = vpop.f32.mrb[74].mxu1 }
 0x1de   :  { %v2943_v25 = vmul.f32 %v2217_v3, %v1310_v31  ;;  %v1263_v21 = vadd.f32 1.0, %v2219_v56  ;;  %v1032_v45 = vadd.f32 %v2867_v43, %v679_v20  ;;  %v2221_v11 = vpop.eup %2220  ;;  %v2951_v31 = vpop.f32.mrb[75].mxu1 }
 0x1df   :  { %2230 = vtanh.f32 %v1170_v0  ;;  %v1034_v54 = vadd.f32 %v2872_v17, %v681_v4  ;;  %v684_v63 = vpop.f32.mrb[80].mxu0 }
 0x1e0   :  { %v1311_v48 = vmul.f32 0.5, %v1263_v21  ;;  %v685_v62 = vadd.f32 %v684_v63, %v2584_v53  ;;  %v686_v57 = vpop.f32.mrb[81].mxu0  ;;  %2232 = vtanh.f32 %v1026_v23 }
 0x1e1   :  { %v2223_v60 = vpop.eup %2222  ;;  %v1171_v27 = vmul.f32 0.5, %v1034_v54  ;;  %v687_v3 = vadd.f32 %v686_v57, %v2591_v55  ;;  %v2958_v54 = vpop.f32.mrb[76].mxu1 }
 0x1e2   :  { %v2953_v15 = vmul.f32 %v2221_v11, %v1311_v48  ;;  %v1264_v43 = vadd.f32 1.0, %v2223_v60  ;;  %v1038_v17 = vadd.f32 %v2879_v26, %v685_v62  ;;  %v2225_v0 = vpop.eup %2224  ;;  %v2963_v60 = vpop.f32.mrb[77].mxu1 }
 0x1e3   :  { %2234 = vtanh.f32 %v1171_v27  ;;  %v1040_v20 = vadd.f32 %v2882_v13, %v687_v3  ;;  %v690_v56 = vpop.f32.mrb[82].mxu0 }
 0x1e4   :  { %v1312_v4 = vmul.f32 0.5, %v1264_v43  ;;  %v691_v21 = vadd.f32 %v690_v56, %v2584_v53  ;;  %v692_v63 = vpop.f32.mrb[83].mxu0  ;;  %2236 = vtanh.f32 %v1032_v45 }
 0x1e5   :  { %v2227_v48 = vpop.eup %2226  ;;  %v1172_v11 = vmul.f32 0.5, %v1040_v20  ;;  %v693_v23 = vadd.f32 %v692_v63, %v2591_v55 }
 0x1e6   :  { %v2965_v27 = vmul.f32 %v2225_v0, %v1312_v4  ;;  %v1265_v26 = vadd.f32 1.0, %v2227_v48  ;;  %v1044_v13 = vadd.f32 %v2889_v51, %v691_v21  ;;  %v2229_v43 = vpop.eup %2228 }
 0x1e7   :  { %2238 = vtanh.f32 %v1172_v11  ;;  %v1046_v62 = vadd.f32 %v2894_v28, %v693_v23  ;;  %v696_v3 = vpop.f32.mrb[84].mxu0 }
 0x1e8   :  { %v1313_v56 = vmul.f32 0.5, %v1265_v26  ;;  %v697_v57 = vadd.f32 %v696_v3, %v2584_v53  ;;  %v698_v50 = vpop.f32.mrb[85].mxu0  ;;  %2240 = vtanh.f32 %v1038_v17 }
 0x1e9   :  { %v2231_v20 = vpop.eup %2230  ;;  %v1173_v42 = vmul.f32 0.5, %v1046_v62  ;;  %v699_v63 = vadd.f32 %v698_v50, %v2591_v55 }
 0x1ea   :  { %v2971_v12 = vmul.f32 %v2229_v43, %v1313_v56  ;;  %v1266_v0 = vadd.f32 1.0, %v2231_v20  ;;  %v1050_v45 = vadd.f32 %v2901_v16, %v697_v57  ;;  %v2233_v4 = vpop.eup %2232 }
 0x1eb   :  { %2242 = vtanh.f32 %v1173_v42  ;;  %v1052_v51 = vadd.f32 %v2904_v58, %v699_v63  ;;  %v702_v28 = vpop.f32.mrb[86].mxu0 }
 0x1ec   :  { %v1314_v21 = vmul.f32 0.5, %v1266_v0  ;;  %v703_v48 = vadd.f32 %v702_v28, %v2584_v53  ;;  %v704_v11 = vpop.f32.mrb[87].mxu0  ;;  %v1862_v23 = vpack.c.bf16 %v2971_v12, %v2965_v27  ;;  %2244 = vtanh.f32 %v1044_v13 }
 0x1ed   :  { %v2235_v26 = vpop.eup %2234  ;;  %v1174_v50 = vmul.f32 0.5, %v1052_v51  ;;  %v705_v62 = vadd.f32 %v704_v11, %v2591_v55 }
 0x1ee   :  { %v2979_v3 = vmul.f32 %v2233_v4, %v1314_v21  ;;  %v1267_v17 = vadd.f32 1.0, %v2235_v26  ;;  %v1056_v42 = vadd.f32 %v2911_v30, %v703_v48  ;;  %v2237_v57 = vpop.eup %2236 }
 0x1ef   :  { %2246 = vtanh.f32 %v1174_v50  ;;  %v1058_v16 = vadd.f32 %v2916_v6, %v705_v62  ;;  %v708_v58 = vpop.f32.mrb[88].mxu0 }
 0x1f0   :  { %v1315_v43 = vmul.f32 0.5, %v1267_v17  ;;  %v709_v56 = vadd.f32 %v708_v58, %v2584_v53  ;;  %v710_v20 = vpop.f32.mrb[89].mxu0  ;;  %2248 = vtanh.f32 %v1050_v45 }
 0x1f1   :  { %v2239_v63 = vpop.eup %2238  ;;  %v1175_v0 = vmul.f32 0.5, %v1058_v16  ;;  %v711_v51 = vadd.f32 %v710_v20, %v2591_v55 }
 0x1f2   :  { %v2985_v28 = vmul.f32 %v2237_v57, %v1315_v43  ;;  %v1268_v4 = vadd.f32 1.0, %v2239_v63  ;;  %v1062_v13 = vadd.f32 %v2923_v1, %v709_v56  ;;  %v2241_v21 = vpop.eup %2240 }
 0x1f3   :  { %2250 = vtanh.f32 %v1175_v0  ;;  %v1064_v30 = vadd.f32 %v2926_v37, %v711_v51  ;;  %v714_v6 = vpop.f32.mrb[90].mxu0 }
 0x1f4   :  { %v1316_v48 = vmul.f32 0.5, %v1268_v4  ;;  %v715_v11 = vadd.f32 %v714_v6, %v2584_v53  ;;  %v716_v26 = vpop.f32.mrb[91].mxu0  ;;  %2252 = vtanh.f32 %v1056_v42 }
 0x1f5   :  { %v2243_v62 = vpop.eup %2242  ;;  %v1176_v17 = vmul.f32 0.5, %v1064_v30  ;;  %v717_v16 = vadd.f32 %v716_v26, %v2591_v55 }
 0x1f6   :  { %v2993_v58 = vmul.f32 %v2241_v21, %v1316_v48  ;;  %v1269_v45 = vadd.f32 1.0, %v2243_v62  ;;  %v1068_v1 = vadd.f32 %v2936_v46, %v715_v11  ;;  %v2245_v43 = vpop.eup %2244 }
 0x1f7   :  { %2254 = vtanh.f32 %v1176_v17  ;;  %v1070_v37 = vadd.f32 %v2941_v33, %v717_v16  ;;  %v720_v57 = vpop.f32.mrb[92].mxu0 }
 0x1f8   :  { %v1317_v56 = vmul.f32 0.5, %v1269_v45  ;;  %v721_v20 = vadd.f32 %v720_v57, %v2584_v53  ;;  %v722_v63 = vpop.f32.mrb[93].mxu0  ;;  %2256 = vtanh.f32 %v1062_v13 }
 0x1f9   :  { %v2247_v0 = vpop.eup %2246  ;;  %v1177_v51 = vmul.f32 0.5, %v1070_v37  ;;  %v723_v4 = vadd.f32 %v722_v63, %v2591_v55 }
 0x1fa   :  { %v2999_v30 = vmul.f32 %v2245_v43, %v1317_v56  ;;  %v1270_v6 = vadd.f32 1.0, %v2247_v0  ;;  %v1074_v42 = vadd.f32 %v2948_v40, %v721_v20  ;;  %v2249_v21 = vpop.eup %2248 }
 0x1fb   :  { %2258 = vtanh.f32 %v1177_v51  ;;  %v1076_v46 = vadd.f32 %v2951_v31, %v723_v4  ;;  %v726_v33 = vpop.f32.mrb[94].mxu0 }
 0x1fc   :  { %v1318_v48 = vmul.f32 0.5, %v1270_v6  ;;  %v727_v11 = vadd.f32 %v726_v33, %v2584_v53  ;;  %v728_v26 = vpop.f32.mrb[95].mxu0  ;;  %2260 = vtanh.f32 %v1068_v1 }
 0x1fd   :  { %v2251_v17 = vpop.eup %2250  ;;  %v1178_v16 = vmul.f32 0.5, %v1076_v46  ;;  %v729_v45 = vadd.f32 %v728_v26, %v2591_v55 }
 0x1fe   :  { %v3007_v37 = vmul.f32 %v2249_v21, %v1318_v48  ;;  %v1271_v13 = vadd.f32 1.0, %v2251_v17  ;;  %v1080_v40 = vadd.f32 %v2958_v54, %v727_v11  ;;  %v2253_v43 = vpop.eup %2252 }
 0x1ff   :  { %2262 = vtanh.f32 %v1178_v16  ;;  %v1082_v31 = vadd.f32 %v2963_v60, %v729_v45  ;;  %v797_v57 = vpop.f32.mrb[0].mxu0 }
 0x200   :  { %v1319_v56 = vmul.f32 0.5, %v1271_v13  ;;  %v799_v20 = vpop.f32.mrb[1].mxu0  ;;  %2264 = vtanh.f32 %v1074_v42  ;;  %v1911_v21 = vadd.f32 %v797_v57, %v2584_v53 }
 0x201   :  { %v2255_v63 = vpop.eup %2254  ;;  %v1179_v0 = vmul.f32 0.5, %v1082_v31  ;;  %v1912_v51 = vadd.f32 %v799_v20, %v2591_v55 }
 0x202   :  { %v3012_v4 = vmul.f32 %v2253_v43, %v1319_v56  ;;  %v1272_v6 = vadd.f32 1.0, %v2255_v63  ;;  %v2257_v33 = vpop.eup %2256 }
 0x203   :  { %2266 = vtanh.f32 %v1179_v0  ;;  %v1132_v46 = vmul.f32 0.5, %v1912_v51  ;;  %v803_v1 = vpop.f32.mrb[2].mxu0 }
 0x204   :  { %v1320_v54 = vmul.f32 0.5, %v1272_v6  ;;  %v805_v60 = vpop.f32.mrb[3].mxu0  ;;  %v1913_v43 = vadd.f32 %v803_v1, %v2584_v53 }
 0x205   :  { %v2259_v11 = vpop.eup %2258  ;;  %2268 = vtanh.f32 %v1132_v46  ;;  %v1914_v26 = vadd.f32 %v805_v60, %v2591_v55 }
 0x206   :  { %v3018_v17 = vmul.f32 %v2257_v33, %v1320_v54  ;;  %v1273_v16 = vadd.f32 1.0, %v2259_v11  ;;  %2270 = vtanh.f32 %v1080_v40  ;;  %v2261_v13 = vpop.eup %2260 }
 0x207   :  { %v1133_v42 = vmul.f32 0.5, %v1914_v26  ;;  %v809_v45 = vpop.f32.mrb[4].mxu0  ;;  %2272 = vtanh.f32 %v1911_v21 }
 0x208   :  { %v1321_v31 = vmul.f32 0.5, %v1273_v16  ;;  %v811_v57 = vpop.f32.mrb[5].mxu0  ;;  %v1915_v40 = vadd.f32 %v809_v45, %v2584_v53 }
 0x209   :  { %v2263_v56 = vpop.eup %2262  ;;  %2274 = vtanh.f32 %v1133_v42  ;;  %v1916_v20 = vadd.f32 %v811_v57, %v2591_v55 }
 0x20a   :  { %v3022_v63 = vmul.f32 %v2261_v13, %v1321_v31  ;;  %v1274_v0 = vadd.f32 1.0, %v2263_v56  ;;  %v2265_v46 = vpop.eup %2264  ;;  %2276 = vtanh.f32 %v1913_v43 }
 0x20b   :  { %v1134_v51 = vmul.f32 0.5, %v1916_v20  ;;  %v815_v6 = vpop.f32.mrb[6].mxu0 }
 0x20c   :  { %v1322_v33 = vmul.f32 0.5, %v1274_v0  ;;  %v817_v54 = vpop.f32.mrb[7].mxu0  ;;  %v1917_v42 = vadd.f32 %v815_v6, %v2584_v53  ;;  %v3137_v12 = vpack.c.bf16 %v3022_v63, %v3018_v17 }
 0x20d   :  { %v2267_v1 = vpop.eup %2266  ;;  %2278 = vtanh.f32 %v1134_v51  ;;  %v1918_v60 = vadd.f32 %v817_v54, %v2591_v55 }
 0x20e   :  { %v3028_v11 = vmul.f32 %v2265_v46, %v1322_v33  ;;  %v1275_v26 = vadd.f32 1.0, %v2267_v1  ;;  %2280 = vtanh.f32 %v1915_v40 }
 0x20f   :  { %v2269_v16 = vpop.eup %2268  ;;  %v1135_v13 = vmul.f32 0.5, %v1918_v60  ;;  %v821_v31 = vpop.f32.mrb[8].mxu0 }
 0x210   :  { %v1323_v57 = vmul.f32 0.5, %v1275_v26  ;;  %v1228_v43 = vadd.f32 1.0, %v2269_v16  ;;  %v823_v45 = vpop.f32.mrb[9].mxu0  ;;  %v2271_v56 = vpop.eup %2270  ;;  %v1919_v60 = vadd.f32 %v821_v31, %v2584_v53 }
 0x211   :  { %2282 = vtanh.f32 %v1135_v13  ;;  %v1920_v20 = vadd.f32 %v823_v45, %v2591_v55  ;;  %v2273_v0 = vpop.eup %2272 }
 0x212   :  { %v3032_v51 = vmul.f32 %v2271_v56, %v1323_v57  ;;  %v1276_v54 = vmul.f32 0.5, %v1228_v43  ;;  %2284 = vtanh.f32 %v1917_v42 }
 0x213   :  { %v2275_v46 = vpop.eup %2274  ;;  %v1136_v33 = vmul.f32 0.5, %v1920_v20  ;;  %v827_v1 = vpop.f32.mrb[10].mxu0 }
 0x214   :  { %v1324_v21 = vmul.f32 %v2273_v0, %v1276_v54  ;;  %v1229_v6 = vadd.f32 1.0, %v2275_v46  ;;  %v829_v26 = vpop.f32.mrb[11].mxu0  ;;  %v2277_v13 = vpop.eup %2276  ;;  %v1921_v20 = vadd.f32 %v827_v1, %v2584_v53 }
 0x215   :  { %2286 = vtanh.f32 %v1136_v33  ;;  %v1922_v16 = vadd.f32 %v829_v26, %v2591_v55 }
 0x216   :  { %v1277_v45 = vmul.f32 0.5, %v1229_v6  ;;  %2288 = vtanh.f32 %v1919_v60 }
 0x217   :  { %v2279_v57 = vpop.eup %2278  ;;  %v1137_v56 = vmul.f32 0.5, %v1922_v16  ;;  %v833_v43 = vpop.f32.mrb[12].mxu0 }
 0x218   :  { %v1325_v48 = vmul.f32 %v2277_v13, %v1277_v45  ;;  %v1230_v42 = vadd.f32 1.0, %v2279_v57  ;;  %v835_v0 = vpop.f32.mrb[13].mxu0  ;;  %v2281_v54 = vpop.eup %2280  ;;  %v1923_v16 = vadd.f32 %v833_v43, %v2584_v53  ;;  %v3122_v45 = vpack.c.bf16 %v2775_v29, %v2765_v22 }
 0x219   :  { %2290 = vtanh.f32 %v1137_v56  ;;  %v1924_v31 = vadd.f32 %v835_v0, %v2591_v55 }
 0x21a   :  { %v1278_v46 = vmul.f32 0.5, %v1230_v42  ;;  %v1825_v40 = vpack.c.bf16 %v1325_v48, %v1324_v21  ;;  %2292 = vtanh.f32 %v1921_v20 }
 0x21b   :  { %v2283_v33 = vpop.eup %2282  ;;  %v1138_v62 = vmul.f32 0.5, %v1924_v31  ;;  %v839_v26 = vpop.f32.mrb[14].mxu0 }
 0x21c   :  { %v1326_v50 = vmul.f32 %v2281_v54, %v1278_v46  ;;  %v1231_v6 = vadd.f32 1.0, %v2283_v33  ;;  %v841_v13 = vpop.f32.mrb[15].mxu0  ;;  %1826 = vmatpush3.bf16.xpose.msra.mxu1 %v1825_v40  ;;  %v2285_v60 = vpop.eup %2284  ;;  %v1925_v20 = vadd.f32 %v839_v26, %v2584_v53 }
 0x21d   :  { %2294 = vtanh.f32 %v1138_v62  ;;  %v1926_v1 = vadd.f32 %v841_v13, %v2591_v55  ;;  %1828 = vmatprep.subr.bf16.mxu1 %v3122_v45 }
 0x21e   :  { %v1279_v57 = vmul.f32 0.5, %v1231_v6  ;;  %2296 = vtanh.f32 %v1923_v16  ;;  %v3123_v16 = vpack.c.bf16 %v2797_v35, %v2787_v24 }
 0x21f   :  { %v2287_v48 = vpop.eup %2286  ;;  %v1139_v21 = vmul.f32 0.5, %v1926_v1  ;;  %v845_v56 = vpop.f32.mrb[16].mxu0 }
 0x220   :  { %v1327_v42 = vmul.f32 %v2285_v60, %v1279_v57  ;;  %v1232_v0 = vadd.f32 1.0, %v2287_v48  ;;  %v847_v43 = vpop.f32.mrb[17].mxu0  ;;  %v2289_v62 = vpop.eup %2288  ;;  %v1927_v6 = vadd.f32 %v845_v56, %v2584_v53  ;;  %v3124_v53 = vpack.c.bf16 %v2819_v5, %v2809_v47 }
 0x221   :  { %2298 = vtanh.f32 %v1139_v21  ;;  %v1928_v40 = vadd.f32 %v847_v43, %v2591_v55  ;;  %v3126_v47 = vpack.c.bf16 %v2863_v38, %v2853_v8  ;;  %v3127_v5 = vpack.c.bf16 %v2677_v61, %v2664_v9 }
 0x222   :  { %v1280_v31 = vmul.f32 0.5, %v1232_v0  ;;  %v1829_v54 = vpack.c.bf16 %v1327_v42, %v1326_v50  ;;  %2300 = vtanh.f32 %v1925_v20  ;;  %v3132_v9 = vpack.c.bf16 %v2930_v19, %v2918_v52 }
 0x223   :  { %v2291_v46 = vpop.eup %2290  ;;  %v1140_v33 = vmul.f32 0.5, %v1928_v40  ;;  %v2386_v61 = vmov 0.0   ;;  %v3138_v8 = vpack.c.bf16 %v3032_v51, %v3028_v11 }
 0x224   :  { %v1328_v22 = vmul.f32 %v2289_v62, %v1280_v31  ;;  %v1233_v29 = vadd.f32 1.0, %v2291_v46  ;;  %1830 = vmatpush3.bf16.xpose.msra.mxu1 %v1829_v54  ;;  %v2293_v26 = vpop.eup %2292  ;;  %v3125_v54 = vpack.c.bf16 %v2841_v36, %v2831_v7  ;;  %v3131_v7 = vpack.c.bf16 %v2733_v41, %v2720_v10 }
 0x225   :  { %2302 = vtanh.f32 %v1140_v33  ;;  %1832 = vmatprep.subr.bf16.mxu1 %v3123_v16  ;;  %v3128_v33 = vpack.c.bf16 %v2885_v2, %v2875_v32  ;;  %v2384_v36 = vmov 0.0|0.0   ;;  %v3135_v10 = vpack.c.bf16 %v2999_v30, %v2993_v58 }
 0x226   :  { %v1281_v13 = vmul.f32 0.5, %v1233_v29  ;;  %2304 = vtanh.f32 %v1927_v6  ;;  %v3136_v41 = vpack.c.bf16 %v3012_v4, %v3007_v37 }
 0x227   :  { %v2295_v60 = vpop.eup %2294 }
 0x228   :  { %v1329_v55 = vmul.f32 %v2293_v26, %v1281_v13  ;;  %v1234_v1 = vadd.f32 1.0, %v2295_v60  ;;  %v2297_v50 = vpop.eup %2296 }
 0x22a   :  { %v1282_v45 = vmul.f32 0.5, %v1234_v1  ;;  %v1833_v57 = vpack.c.bf16 %v1329_v55, %v1328_v22  ;;  %v3129_v22 = vpack.c.bf16 %v2705_v18, %v2692_v49  ;;  %v3133_v49 = vpack.c.bf16 %v2953_v15, %v2943_v25 }
 0x22b   :  { %v2299_v48 = vpop.eup %2298  ;;  %v3134_v18 = vpack.c.bf16 %v2985_v28, %v2979_v3  ;;  %v3139_v28 = vlaneseq }
 0x22c   :  { %v1330_v21 = vmul.f32 %v2297_v50, %v1282_v45  ;;  %v1235_v42 = vadd.f32 1.0, %v2299_v48  ;;  %1834 = vmatpush3.bf16.xpose.msra.mxu1 %v1833_v57  ;;  %v2301_v56 = vpop.eup %2300 }
 0x22d   :  { %1836 = vmatprep.subr.bf16.mxu1 %v3124_v53  ;;  %vm1590_vm1 = vcmp.lt.s32.totalorder %v3139_v28, 384 }
 0x22e   :  { %v1283_v24 = vmul.f32 0.5, %v1235_v42 }
 0x22f   :  { %v2303_v35 = vpop.eup %2302 }
 0x230   :  { %v1331_v0 = vmul.f32 %v2301_v56, %v1283_v24  ;;  %v1236_v20 = vadd.f32 1.0, %v2303_v35  ;;  %v2305_v62 = vpop.eup %2304 }
 0x232   :  { %v1284_v43 = vmul.f32 0.5, %v1236_v20  ;;  %v1837_v40 = vpack.c.bf16 %v1331_v0, %v1330_v21 }
 0x234   :  { %v1332_v31 = vmul.f32 %v2305_v62, %v1284_v43  ;;  %1838 = vmatpush3.bf16.xpose.msra.mxu1 %v1837_v40 }
 0x235   :  { %1840 = vmatprep.subr.bf16.mxu1 %v3125_v54 }
 0x236   :  { %v1841_v46 = vpack.c.bf16 %v2651_v59, %v1332_v31  ;;  %v3130_v59 = vpack.c.bf16 %v2907_v39, %v2897_v34  ;;  %v2387_v34 = vmov 1966171168  }
 0x237   :  { %v1566_v39 = vunpack.c.l.s4 %v2387_v34 }
 0x239   :  { %v1567_v52 = vunpack.c.0.s8 %v1566_v39 }
 0x23b   :  { %v1570_v19 = vsub.s32 %v1567_v52, %v2567_v44 }
 0x23c   :  { %1842 = vmatpush3.bf16.xpose.msra.mxu1 %v1841_v46 }
 0x23d   :  { %1844 = vmatprep.subr.bf16.mxu1 %v3126_v47 }
 0x244   :  { %1846 = vmatpush3.bf16.xpose.msra.mxu1 %v3127_v5 }
 0x245   :  { %1848 = vmatprep.subr.bf16.mxu1 %v3128_v33 }
 0x24c   :  { %1850 = vmatpush3.bf16.xpose.msra.mxu1 %v3129_v22 }
 0x24d   :  { %1852 = vmatprep.subr.bf16.mxu1 %v3130_v59 }
 0x254   :  { %1854 = vmatpush3.bf16.xpose.msra.mxu1 %v3131_v7 }
 0x255   :  { %1855 = vmatprep.subr.bf16.mxu1 %v2384_v36 }
 0x25b   :  { %1642 = vmatmul.mubr.f32.vlgmr.msra.gmra.mrb[78].mxu1 %v2928_v14 }
 0x25c   :  { %1857 = vmatpush3.bf16.xpose.msra.mxu1 %v3132_v9  ;;  %1692 = vmatprep.mubr.msk.f32.mxu1 %vm2385_vm0, %v2386_v61 }
 0x25d   :  { %1858 = vmatprep.subr.bf16.mxu1 %v2384_v36 }
 0x264   :  { %1860 = vmatpush3.bf16.xpose.msra.mxu1 %v3133_v49 }
 0x265   :  { %1861 = vmatprep.subr.bf16.mxu1 %v2384_v36 }
 0x26c   :  { %1863 = vmatpush3.bf16.xpose.msra.mxu1 %v1862_v23 }
 0x26d   :  { %1864 = vmatprep.subr.bf16.mxu1 %v2384_v36 }
 0x274   :  { %1866 = vmatpush3.bf16.xpose.msra.mxu1 %v3134_v18 }
 0x275   :  { %1867 = vmatprep.subr.bf16.mxu1 %v2384_v36 }
 0x27c   :  { %1869 = vmatpush3.bf16.xpose.msra.mxu1 %v3135_v10 }
 0x27d   :  { %1870 = vmatprep.subr.bf16.mxu1 %v2384_v36 }
 0x284   :  { %1872 = vmatpush3.bf16.xpose.msra.mxu1 %v3136_v41 }
 0x285   :  { %1873 = vmatprep.subr.bf16.mxu1 %v2384_v36 }
 0x28c   :  { %1875 = vmatpush3.bf16.xpose.msra.mxu1 %v3137_v12 }
 0x28d   :  { %1876 = vmatprep.subr.bf16.mxu1 %v2384_v36 }
 0x294   :  { %1878 = vmatpush3.bf16.xpose.msra.mxu1 %v3138_v8 }
 0x29b   :  { %1693 = vmatmul.mubr.f32.vlgmr.msra.gmra.mrb[80].mxu1 %v2928_v14 }
 0x32e   :  { %v1486_v38 = vpop.f32.mrb[78].mxu1 }
 0x32f   :  { %v1488_v32 = vpop.f32.mrb[79].mxu1 }
 0x330   :  { %v1564_v2 = vcombine.low %v1486_v38, %v1488_v32 }
 0x332   :  { %v1571_v15 = vrot.slane %v1564_v2, %v1570_v19 }
 0x36e   :  { %v1557_v25 = vpop.f32.mrb[80].mxu1 }
 0x36f   :  { %v1578_v27 = vrot.slane %v1557_v25, %v1570_v19  ;;  %v1694_v23 = vpop.f32.mrb[81].mxu1 }
 0x371   :  { %v1579_v3 = vcombine.low %v1571_v15, %v1578_v27 }
 0x373   :  { %v1586_v58 = vrot.slane %v1579_v3, %v1570_v19 }
 0x375   :  { %1592 = vst.msk [vmem:[#allocation7] sm:$0x7] %vm1590_vm1, %v1586_v58 }
 0x376   :  { %2361 = shalt.err (!%p2358_p6)
}
 0x377   :  { %s2362_s25 = scalar_lea.hbm %s3120_s4, 48 }
 0x378   :  { %p2363_p7 = scmp.ne.s32.totalorder %s3120_s4, %s2362_s25  ;;  %p2366_p8 = scmp.lt.u32.totalorder %s2362_s25, %s3120_s4 }
 0x37a   :  { %p2368_p9 = pnand %p2366_p8, %p2363_p7 }
 0x37c   :  { %2371 = shalt.err (!%p2368_p9)
}
 0x37d   :  { %1602 = dma.vmem_to_hbm [thread:$0]  %s1600_s21, 48, %s3120_s4, [#allocation4]  }
 0x37e   :  { %2376 = dma.done.wait [#allocation4], 48  }
 0x37f   :  { %2377 = vsyncadd [#allocation4], 4294967248 }
 0x380   :  { %1606 = vsyncpa [#allocation3], 1 }
 0x381   :  { %1607 = vsyncpa [#allocation6], 1 }
 0x382   :  { %1608 = vsyncpa [#allocation4], 1 }

</bundles_post_ra>
